<compile_context>
chip_gen: v7x
topology: tpu7x:2x2x1
jax: 0.10.0
libtpu: 0.0.40
codegen_flags: <defaults>
</compile_context>

<pallas_src>
import jax
import jax.numpy as jnp
from jax.experimental import pallas as pl
from jax.experimental.pallas import tpu as pltpu

# ----------------------------- model hyper-params (small) ------------------------------
B = 2            # batch
C_IN = 3         # RGB
IMG = 16         # H = W
PATCH = 8        # patch size  -> 2x2 = 4 patches
EMBED = 32       # embed dim
DEPTH = 2        # transformer blocks
HEADS = 4
HEAD_DIM = EMBED // HEADS
MLP_HIDDEN = 4 * EMBED
N_PATCHES = (IMG // PATCH) ** 2
N_TOKENS = 1 + N_PATCHES          # cls + patches = 5
N_PAD = 8                         # tokens padded to a full sublane group
LN_EPS = 1e-6
LAYER_SCALE_INIT = 0.1
ATTN_SCALE = HEAD_DIM ** -0.5
PATCH_FEAT = C_IN * PATCH * PATCH


# =============================== fused Pallas kernel ===============================

def _layernorm(x, g, b):
    """Row-wise LayerNorm in f32. x:[M,D], g,b:[1,D]."""
    mu = jnp.mean(x, axis=-1, keepdims=True)
    xc = x - mu
    var = jnp.mean(xc * xc, axis=-1, keepdims=True)
    return xc * jax.lax.rsqrt(var + LN_EPS) * g + b


def _encoder_kernel(
    # per-batch blocks
    patches_ref, base_ref,
    # shared weights (full VMEM blocks, per-depth stacked on the leading axis)
    patch_w_ref,
    wqkv_ref, qb_ref, vb_ref, rel_bias_ref, wproj_ref, proj_b_ref,
    ln1_g_ref, ln1_b_ref, gamma1_ref,
    ln2_g_ref, ln2_b_ref, fc1_w_ref, fc1_b_ref, fc2_w_ref, fc2_b_ref, gamma2_ref,
    norm_g_ref, norm_b_ref,
    # output
    out_ref,
):
    bf16 = jnp.bfloat16

    # ---- patch embed: single full-tile compute (cls/pos/patch_b pre-folded into base) ----
    x = base_ref[...] + jnp.dot(patches_ref[...], patch_w_ref[...],
                                preferred_element_type=jnp.float32)          # [N_PAD, D] f32

    for d in range(DEPTH):     # depth unrolled in-kernel — no per-layer grid-step overhead
        # ------------------------------ attention branch ------------------------------
        h = _layernorm(x, ln1_g_ref[d], ln1_b_ref[d])
        hb = jnp.broadcast_to(h.astype(bf16)[None], (3 * HEADS, N_PAD, EMBED))
        # head-major batched QKV projection: [3H, N_PAD, Dh], f32 accumulation
        qkv = jnp.einsum('gme,ged->gmd', hb, wqkv_ref[d],
                         preferred_element_type=jnp.float32)
        q = qkv[0:HEADS] + qb_ref[d]          # attn scale pre-folded into W_q / q_bias
        k = qkv[HEADS:2 * HEADS]              # BEiT: k bias is fixed to zero
        v = qkv[2 * HEADS:3 * HEADS] + vb_ref[d]

        s = jnp.einsum('hqd,hkd->hqk', q.astype(bf16), k.astype(bf16),
                       preferred_element_type=jnp.float32)                   # [H, Np, Np]
        s = s + rel_bias_ref[d]               # f32; padded key columns carry -1e30
        s = s - jnp.max(s, axis=-1, keepdims=True)
        p = jnp.exp(s)
        p = p * pl.reciprocal(jnp.sum(p, axis=-1, keepdims=True), approx=True)

        o = jnp.einsum('hqk,hkd->hqd', p.astype(bf16), v.astype(bf16),
                       preferred_element_type=jnp.float32)                   # [H, Np, Dh]
        # fold head-merge + output projection: sum_h o_h @ W_h
        attn = jnp.einsum('hqd,hde->hqe', o.astype(bf16), wproj_ref[d],
                          preferred_element_type=jnp.float32).sum(axis=0)    # [Np, D]
        x = x + gamma1_ref[d] * (attn + proj_b_ref[d])                       # layer-scale residual

        # --------------------------------- MLP branch ---------------------------------
        h = _layernorm(x, ln2_g_ref[d], ln2_b_ref[d])
        u = jnp.dot(h.astype(bf16), fc1_w_ref[d],
                    preferred_element_type=jnp.float32) + fc1_b_ref[d]
        # TODO(synk): PyTorch nn.GELU defaults to the erf form; tanh approximation used here.
        u = jax.nn.gelu(u, approximate=True)
        y = jnp.dot(u.astype(bf16), fc2_w_ref[d],
                    preferred_element_type=jnp.float32) + fc2_b_ref[d]
        x = x + gamma2_ref[d] * y                                            # layer-scale residual

    # ------------------------------ final LayerNorm -------------------------------------
    out_ref[...] = _layernorm(x, norm_g_ref[...], norm_b_ref[...]).astype(out_ref.dtype)


def _encoder_call(kp, patches_pad):
    def const(a):  # full-array block, same for every grid step (DMA'd once)
        return pl.BlockSpec(a.shape, lambda b, _n=a.ndim: (0,) * _n)

    in_specs = [
        pl.BlockSpec((None, N_PAD, PATCH_FEAT), lambda b: (b, 0, 0)),   # patches (per-batch)
        const(kp["base"]),
        const(kp["patch_w"]),
        const(kp["wqkv"]), const(kp["q_bias"]), const(kp["v_bias"]),
        const(kp["rel_bias"]), const(kp["wproj"]), const(kp["proj_b"]),
        const(kp["ln1_g"]), const(kp["ln1_b"]), const(kp["gamma1"]),
        const(kp["ln2_g"]), const(kp["ln2_b"]),
        const(kp["fc1_w"]), const(kp["fc1_b"]), const(kp["fc2_w"]), const(kp["fc2_b"]),
        const(kp["gamma2"]),
        const(kp["norm_g"]), const(kp["norm_b"]),
    ]

    return pl.pallas_call(
        _encoder_kernel,
        out_shape=jax.ShapeDtypeStruct((B, N_PAD, EMBED), jnp.float32),
        grid=(B,),                                         # batch axis only; v7x: 2 TCs
        in_specs=in_specs,
        out_specs=pl.BlockSpec((None, N_PAD, EMBED), lambda b: (b, 0, 0)),
        compiler_params=pltpu.CompilerParams(dimension_semantics=("parallel",)),
    )(patches_pad, kp["base"], kp["patch_w"],
      kp["wqkv"], kp["q_bias"], kp["v_bias"], kp["rel_bias"], kp["wproj"], kp["proj_b"],
      kp["ln1_g"], kp["ln1_b"], kp["gamma1"],
      kp["ln2_g"], kp["ln2_b"], kp["fc1_w"], kp["fc1_b"], kp["fc2_w"], kp["fc2_b"],
      kp["gamma2"], kp["norm_g"], kp["norm_b"])


# =============================== parameters ===============================

def init_params(key):
    """Canonical (PyTorch-layout, f32) parameters — used by the pure-JAX reference."""
    keys = iter(jax.random.split(key, 64))
    nrm = lambda shape, s=0.02: (s * jax.random.normal(next(keys), shape)).astype(jnp.float32)

    blocks = {
        "ln1_g": jnp.ones((DEPTH, EMBED), jnp.float32),
        "ln1_b": jnp.zeros((DEPTH, EMBED), jnp.float32),
        "qkv_w": nrm((DEPTH, EMBED, 3 * EMBED)),
        # BEiT qkv bias: learnable q_bias & v_bias, k bias fixed to zero.
        "q_bias": nrm((DEPTH, EMBED)),
        "v_bias": nrm((DEPTH, EMBED)),
        # TODO(synk): BEiT gathers this bias from a relative-position table via an index
        # lookup; here it is parameterized densely per (head, token, token).
        "rel_bias": nrm((DEPTH, HEADS, N_TOKENS, N_TOKENS)),
        "proj_w": nrm((DEPTH, EMBED, EMBED)),
        "proj_b": jnp.zeros((DEPTH, EMBED), jnp.float32),
        "gamma1": LAYER_SCALE_INIT * jnp.ones((DEPTH, EMBED), jnp.float32),
        "ln2_g": jnp.ones((DEPTH, EMBED), jnp.float32),
        "ln2_b": jnp.zeros((DEPTH, EMBED), jnp.float32),
        "fc1_w": nrm((DEPTH, EMBED, MLP_HIDDEN)),
        "fc1_b": jnp.zeros((DEPTH, MLP_HIDDEN), jnp.float32),
        "fc2_w": nrm((DEPTH, MLP_HIDDEN, EMBED)),
        "fc2_b": jnp.zeros((DEPTH, EMBED), jnp.float32),
        "gamma2": LAYER_SCALE_INIT * jnp.ones((DEPTH, EMBED), jnp.float32),
    }
    return {
        "patch_w": nrm((PATCH_FEAT, EMBED)),   # Conv2d(k=p, s=p) weight flattened (c,i,j)
        "patch_b": jnp.zeros((EMBED,), jnp.float32),
        "cls_token": nrm((1, 1, EMBED)),
        "pos_embed": nrm((1, N_TOKENS, EMBED)),   # pos_embed='2d' learned abs positions
        "norm_g": jnp.ones((EMBED,), jnp.float32),
        "norm_b": jnp.zeros((EMBED,), jnp.float32),
        "blocks": blocks,
    }


def pack_kernel_params(params):
    """One-time repacking for the kernel: head-major bf16 weights, attn scale folded,
    cls/pos/patch_b folded into a padded per-token base, -1e30 key mask baked into rel_bias."""
    blk = params["blocks"]
    D, E, H, Dh = DEPTH, EMBED, HEADS, HEAD_DIM
    bf16 = jnp.bfloat16

    # qkv weight [D, E, 3E] -> head-major [D, 3H, E, Dh]; fold ATTN_SCALE into the Q part.
    wqkv = blk["qkv_w"].reshape(D, E, 3, H, Dh).transpose(0, 2, 3, 1, 4).reshape(D, 3 * H, E, Dh)
    wqkv = wqkv.at[:, :H].multiply(ATTN_SCALE)
    q_bias = (blk["q_bias"] * ATTN_SCALE).reshape(D, H, 1, Dh)
    v_bias = blk["v_bias"].reshape(D, H, 1, Dh)

    # dense relative bias padded to N_PAD, padded key columns masked with -1e30 (kept f32)
    key_pad = (jnp.arange(N_PAD) >= N_TOKENS)[None, None, None, :]
    rb = jnp.zeros((D, H, N_PAD, N_PAD), jnp.float32)
    rb = rb.at[:, :, :N_TOKENS, :N_TOKENS].set(blk["rel_bias"])
    rb = jnp.where(key_pad, jnp.float32(-1e30), rb)

    wproj = blk["proj_w"].reshape(D, H, Dh, E)

    # per-token base: pos (+cls at row 0) (+patch_b on patch rows), zero padding rows
    base = jnp.zeros((N_PAD, E), jnp.float32)
    base = base.at[:N_TOKENS].set(params["pos_embed"][0])
    base = base.at[0].add(params["cls_token"][0, 0])
    base = base.at[1:N_TOKENS].add(params["patch_b"])

    row = lambda a: a.reshape(D, 1, -1)
    return {
        "patch_w": params["patch_w"],                    # f32 (raw image magnitudes)
        "base": base,
        "wqkv": wqkv.astype(bf16),
        "q_bias": q_bias, "v_bias": v_bias,
        "rel_bias": rb,
        "wproj": wproj.astype(bf16),
        "proj_b": row(blk["proj_b"]),
        "ln1_g": row(blk["ln1_g"]), "ln1_b": row(blk["ln1_b"]), "gamma1": row(blk["gamma1"]),
        "ln2_g": row(blk["ln2_g"]), "ln2_b": row(blk["ln2_b"]),
        "fc1_w": blk["fc1_w"].astype(bf16), "fc1_b": row(blk["fc1_b"]),
        "fc2_w": blk["fc2_w"].astype(bf16), "fc2_b": row(blk["fc2_b"]),
        "gamma2": row(blk["gamma2"]),
        "norm_g": params["norm_g"].reshape(1, E), "norm_b": params["norm_b"].reshape(1, E),
    }


# =============================== forward pass =================================

def encoder_beit_forward(kparams, imgs):
    """EncoderBeit.forward(imgs, f2d=True, pool=False) -> tokens [B, 1+Np, D]."""
    Bn, Cn, Hh, Ww = imgs.shape
    p = PATCH
    Hp, Wp = Hh // p, Ww // p

    # patchify (Conv2d(k=p, s=p) == patchify + matmul; matmul done in-kernel) and
    # pre-pad to N_PAD token rows (zero rows at cls and pad positions).
    patches = imgs.reshape(Bn, Cn, Hp, p, Wp, p).transpose(0, 2, 4, 1, 3, 5)
    patches = patches.reshape(Bn, Hp * Wp, Cn * p * p)
    patches_pad = jnp.zeros((Bn, N_PAD, PATCH_FEAT), jnp.float32)
    patches_pad = patches_pad.at[:, 1:N_TOKENS, :].set(patches)

    out = _encoder_call(kparams, patches_pad)            # [B, N_PAD, D]
    return out[:, :N_TOKENS, :]                          # drop padded token rows


# =============================== pure-JAX reference ===========================

def reference_forward(params, imgs):
    Bn = imgs.shape[0]
    p = PATCH
    Hp = Wp = IMG // p
    patches = imgs.reshape(Bn, C_IN, Hp, p, Wp, p).transpose(0, 2, 4, 1, 3, 5)
    patches = patches.reshape(Bn, N_PATCHES, PATCH_FEAT)
    tok = patches @ params["patch_w"] + params["patch_b"]
    cls = jnp.broadcast_to(params["cls_token"], (Bn, 1, EMBED))
    x = jnp.concatenate([cls, tok], axis=1) + params["pos_embed"]

    def ln(x, g, b):
        mu = x.mean(-1, keepdims=True)
        xc = x - mu
        var = (xc * xc).mean(-1, keepdims=True)
        return xc * jax.lax.rsqrt(var + LN_EPS) * g + b

    blk = params["blocks"]
    for d in range(DEPTH):
        h = ln(x, blk["ln1_g"][d], blk["ln1_b"][d])
        qkv_b = jnp.concatenate([blk["q_bias"][d], jnp.zeros((EMBED,), jnp.float32),
                                 blk["v_bias"][d]])
        qkv = h @ blk["qkv_w"][d] + qkv_b
        qkv = qkv.reshape(Bn, N_TOKENS, 3, HEADS, HEAD_DIM).transpose(2, 0, 3, 1, 4)
        q, k, v = qkv[0] * ATTN_SCALE, qkv[1], qkv[2]
        s = jnp.einsum('bhqd,bhkd->bhqk', q, k) + blk["rel_bias"][d][None]
        pr = jax.nn.softmax(s, axis=-1)
        o = jnp.einsum('bhqk,bhkd->bhqd', pr, v).transpose(0, 2, 1, 3).reshape(Bn, N_TOKENS, EMBED)
        o = o @ blk["proj_w"][d] + blk["proj_b"][d]
        x = x + blk["gamma1"][d] * o

        h = ln(x, blk["ln2_g"][d], blk["ln2_b"][d])
        h = jax.nn.gelu(h @ blk["fc1_w"][d] + blk["fc1_b"][d], approximate=True)
        h = h @ blk["fc2_w"][d] + blk["fc2_b"][d]
        x = x + blk["gamma2"][d] * h

    return ln(x, params["norm_g"], params["norm_b"])


# =============================== driver =======================================

if __name__ == "__main__":
    key = jax.random.PRNGKey(0)
    k_param, k_img = jax.random.split(key)
    params = init_params(k_param)
    kparams = pack_kernel_params(params)     # one-time packing, NOT per-call work
    imgs = jax.random.normal(k_img, (B, C_IN, IMG, IMG), dtype=jnp.float32)

    fwd = jax.jit(encoder_beit_forward)
    out = jax.block_until_ready(fwd(kparams, imgs))

    assert out.shape == (B, N_TOKENS, EMBED), out.shape
    assert jnp.isfinite(out).all()

    ref = jax.jit(reference_forward)(params, imgs)
    err = float(jnp.max(jnp.abs(out - ref)))
    assert jnp.allclose(out, ref, atol=1e-2, rtol=1e-2), err

    print("KERNEL_OK")
</pallas_src>

<mosaic_0001>
module attributes {stable_mosaic.version = 11 : i64} {
  func.func @_encoder_kernel(%arg0: i32, %arg1: memref<1x8x192xf32, #tpu.memory_space<vmem>>, %arg2: memref<8x32xf32, #tpu.memory_space<vmem>>, %arg3: memref<192x32xf32, #tpu.memory_space<vmem>>, %arg4: memref<2x12x32x8xbf16, #tpu.memory_space<vmem>>, %arg5: memref<2x4x1x8xf32, #tpu.memory_space<vmem>>, %arg6: memref<2x4x1x8xf32, #tpu.memory_space<vmem>>, %arg7: memref<2x4x8x8xf32, #tpu.memory_space<vmem>>, %arg8: memref<2x4x8x32xbf16, #tpu.memory_space<vmem>>, %arg9: memref<2x1x32xf32, #tpu.memory_space<vmem>>, %arg10: memref<2x1x32xf32, #tpu.memory_space<vmem>>, %arg11: memref<2x1x32xf32, #tpu.memory_space<vmem>>, %arg12: memref<2x1x32xf32, #tpu.memory_space<vmem>>, %arg13: memref<2x1x32xf32, #tpu.memory_space<vmem>>, %arg14: memref<2x1x32xf32, #tpu.memory_space<vmem>>, %arg15: memref<2x32x128xbf16, #tpu.memory_space<vmem>>, %arg16: memref<2x1x128xf32, #tpu.memory_space<vmem>>, %arg17: memref<2x128x32xbf16, #tpu.memory_space<vmem>>, %arg18: memref<2x1x32xf32, #tpu.memory_space<vmem>>, %arg19: memref<2x1x32xf32, #tpu.memory_space<vmem>>, %arg20: memref<1x32xf32, #tpu.memory_space<vmem>>, %arg21: memref<1x32xf32, #tpu.memory_space<vmem>>, %arg22: memref<1x8x32xf32, #tpu.memory_space<vmem>>) attributes {dimension_semantics = [#tpu.dimension_semantics<parallel>], iteration_bounds = array<i64: 2>, scalar_prefetch = 0 : i64, scratch_operands = 0 : i64, tpu.core_type = #tpu.core_type<tc>, window_params = [{transform_indices = @transform_0, window_bounds = array<i64: 1, 8, 192>}, {pipeline_mode = #tpu.pipeline_mode<synchronous>, transform_indices = @transform_1, window_bounds = array<i64: 8, 32>}, {pipeline_mode = #tpu.pipeline_mode<synchronous>, transform_indices = @transform_2, window_bounds = array<i64: 192, 32>}, {pipeline_mode = #tpu.pipeline_mode<synchronous>, transform_indices = @transform_3, window_bounds = array<i64: 2, 12, 32, 8>}, {pipeline_mode = #tpu.pipeline_mode<synchronous>, transform_indices = @transform_4, window_bounds = array<i64: 2, 4, 1, 8>}, {pipeline_mode = #tpu.pipeline_mode<synchronous>, transform_indices = @transform_5, window_bounds = array<i64: 2, 4, 1, 8>}, {pipeline_mode = #tpu.pipeline_mode<synchronous>, transform_indices = @transform_6, window_bounds = array<i64: 2, 4, 8, 8>}, {pipeline_mode = #tpu.pipeline_mode<synchronous>, transform_indices = @transform_7, window_bounds = array<i64: 2, 4, 8, 32>}, {pipeline_mode = #tpu.pipeline_mode<synchronous>, transform_indices = @transform_8, window_bounds = array<i64: 2, 1, 32>}, {pipeline_mode = #tpu.pipeline_mode<synchronous>, transform_indices = @transform_9, window_bounds = array<i64: 2, 1, 32>}, {pipeline_mode = #tpu.pipeline_mode<synchronous>, transform_indices = @transform_10, window_bounds = array<i64: 2, 1, 32>}, {pipeline_mode = #tpu.pipeline_mode<synchronous>, transform_indices = @transform_11, window_bounds = array<i64: 2, 1, 32>}, {pipeline_mode = #tpu.pipeline_mode<synchronous>, transform_indices = @transform_12, window_bounds = array<i64: 2, 1, 32>}, {pipeline_mode = #tpu.pipeline_mode<synchronous>, transform_indices = @transform_13, window_bounds = array<i64: 2, 1, 32>}, {pipeline_mode = #tpu.pipeline_mode<synchronous>, transform_indices = @transform_14, window_bounds = array<i64: 2, 32, 128>}, {pipeline_mode = #tpu.pipeline_mode<synchronous>, transform_indices = @transform_15, window_bounds = array<i64: 2, 1, 128>}, {pipeline_mode = #tpu.pipeline_mode<synchronous>, transform_indices = @transform_16, window_bounds = array<i64: 2, 128, 32>}, {pipeline_mode = #tpu.pipeline_mode<synchronous>, transform_indices = @transform_17, window_bounds = array<i64: 2, 1, 32>}, {pipeline_mode = #tpu.pipeline_mode<synchronous>, transform_indices = @transform_18, window_bounds = array<i64: 2, 1, 32>}, {pipeline_mode = #tpu.pipeline_mode<synchronous>, transform_indices = @transform_19, window_bounds = array<i64: 1, 32>}, {pipeline_mode = #tpu.pipeline_mode<synchronous>, transform_indices = @transform_20, window_bounds = array<i64: 1, 32>}, {transform_indices = @transform_21, window_bounds = array<i64: 1, 8, 32>}]} {
    %c0 = arith.constant 0 : index
    %c0_0 = arith.constant 0 : index
    %0 = vector.load %arg2[%c0, %c0_0] : memref<8x32xf32, #tpu.memory_space<vmem>>, vector<8x32xf32>
    %c0_1 = arith.constant 0 : index
    %c0_2 = arith.constant 0 : index
    %c0_3 = arith.constant 0 : index
    %1 = vector.load %arg1[%c0_1, %c0_2, %c0_3] : memref<1x8x192xf32, #tpu.memory_space<vmem>>, vector<1x8x192xf32>
    %2 = vector.shape_cast %1 : vector<1x8x192xf32> to vector<8x192xf32>
    %c0_4 = arith.constant 0 : index
    %c0_5 = arith.constant 0 : index
    %3 = vector.load %arg3[%c0_4, %c0_5] : memref<192x32xf32, #tpu.memory_space<vmem>>, vector<192x32xf32>
    %cst = arith.constant dense<0.000000e+00> : vector<8x32xf32>
    %4 = tpu.matmul %2, %3, %cst {dimension_numbers = #tpu.dot_dimension_numbers<[1], [0], [0], [1], [0, 0, 1, 1], [], []>} : vector<8x192xf32>, vector<192x32xf32>, vector<8x32xf32> -> vector<8x32xf32>
    %5 = arith.addf %0, %4 : vector<8x32xf32>
    %c0_6 = arith.constant 0 : index
    %c0_7 = arith.constant 0 : index
    %c0_8 = arith.constant 0 : index
    %6 = vector.load %arg10[%c0_6, %c0_7, %c0_8] : memref<2x1x32xf32, #tpu.memory_space<vmem>>, vector<1x1x32xf32>
    %7 = vector.shape_cast %6 : vector<1x1x32xf32> to vector<1x32xf32>
    %c0_9 = arith.constant 0 : index
    %c0_10 = arith.constant 0 : index
    %c0_11 = arith.constant 0 : index
    %8 = vector.load %arg11[%c0_9, %c0_10, %c0_11] : memref<2x1x32xf32, #tpu.memory_space<vmem>>, vector<1x1x32xf32>
    %9 = vector.shape_cast %8 : vector<1x1x32xf32> to vector<1x32xf32>
    %cst_12 = arith.constant dense<0.000000e+00> : vector<8xf32>
    %10 = vector.multi_reduction <add>, %5, %cst_12 [1] : vector<8x32xf32> to vector<8xf32>
    %11 = vector.shape_cast %10 : vector<8xf32> to vector<8x1xf32>
    %cst_13 = arith.constant 3.200000e+01 : f32
    %12 = vector.broadcast %cst_13 : f32 to vector<8x1xf32>
    %13 = arith.divf %11, %12 : vector<8x1xf32>
    %14 = vector.broadcast %13 : vector<8x1xf32> to vector<8x32xf32>
    %15 = arith.subf %5, %14 : vector<8x32xf32>
    %16 = arith.mulf %15, %15 : vector<8x32xf32>
    %cst_14 = arith.constant dense<0.000000e+00> : vector<8xf32>
    %17 = vector.multi_reduction <add>, %16, %cst_14 [1] : vector<8x32xf32> to vector<8xf32>
    %18 = vector.shape_cast %17 : vector<8xf32> to vector<8x1xf32>
    %cst_15 = arith.constant 3.200000e+01 : f32
    %19 = vector.broadcast %cst_15 : f32 to vector<8x1xf32>
    %20 = arith.divf %18, %19 : vector<8x1xf32>
    %cst_16 = arith.constant 9.99999997E-7 : f32
    %21 = vector.broadcast %cst_16 : f32 to vector<8x1xf32>
    %22 = arith.addf %20, %21 : vector<8x1xf32>
    %23 = math.rsqrt %22 : vector<8x1xf32>
    %24 = vector.broadcast %23 : vector<8x1xf32> to vector<8x32xf32>
    %25 = arith.mulf %15, %24 : vector<8x32xf32>
    %26 = vector.broadcast %7 : vector<1x32xf32> to vector<8x32xf32>
    %27 = arith.mulf %25, %26 : vector<8x32xf32>
    %28 = vector.broadcast %9 : vector<1x32xf32> to vector<8x32xf32>
    %29 = arith.addf %27, %28 : vector<8x32xf32>
    %30 = arith.truncf %29 : vector<8x32xf32> to vector<8x32xbf16>
    %31 = vector.shape_cast %30 : vector<8x32xbf16> to vector<1x8x32xbf16>
    %32 = vector.shape_cast %31 : vector<1x8x32xbf16> to vector<1x8x32xbf16>
    %33 = vector.broadcast %32 : vector<1x8x32xbf16> to vector<12x8x32xbf16>
    %c0_17 = arith.constant 0 : index
    %c0_18 = arith.constant 0 : index
    %c0_19 = arith.constant 0 : index
    %c0_20 = arith.constant 0 : index
    %34 = vector.load %arg4[%c0_17, %c0_18, %c0_19, %c0_20] : memref<2x12x32x8xbf16, #tpu.memory_space<vmem>>, vector<1x12x32x8xbf16>
    %35 = vector.shape_cast %34 : vector<1x12x32x8xbf16> to vector<12x32x8xbf16>
    "tpu.trace_start"() <{level = 10 : i32, message = "gme,ged->gmd"}> : () -> ()
    %cst_21 = arith.constant dense<0.000000e+00> : vector<12x8x8xf32>
    %36 = tpu.matmul %33, %35, %cst_21 {dimension_numbers = #tpu.dot_dimension_numbers<[2], [1], [1], [2], [0, 0, 0, 1, 1, 2], [0], [0]>} : vector<12x8x32xbf16>, vector<12x32x8xbf16>, vector<12x8x8xf32> -> vector<12x8x8xf32>
    "tpu.trace_stop"() : () -> ()
    %37 = vector.extract_strided_slice %36 {offsets = [0, 0, 0], sizes = [4, 8, 8], strides = [1, 1, 1]} : vector<12x8x8xf32> to vector<4x8x8xf32>
    %c0_22 = arith.constant 0 : index
    %c0_23 = arith.constant 0 : index
    %c0_24 = arith.constant 0 : index
    %c0_25 = arith.constant 0 : index
    %38 = vector.load %arg5[%c0_22, %c0_23, %c0_24, %c0_25] : memref<2x4x1x8xf32, #tpu.memory_space<vmem>>, vector<1x4x1x8xf32>
    %39 = vector.shape_cast %38 : vector<1x4x1x8xf32> to vector<4x1x8xf32>
    %40 = vector.broadcast %39 : vector<4x1x8xf32> to vector<4x8x8xf32>
    %41 = arith.addf %37, %40 : vector<4x8x8xf32>
    %42 = vector.extract_strided_slice %36 {offsets = [4, 0, 0], sizes = [4, 8, 8], strides = [1, 1, 1]} : vector<12x8x8xf32> to vector<4x8x8xf32>
    %43 = vector.extract_strided_slice %36 {offsets = [8, 0, 0], sizes = [4, 8, 8], strides = [1, 1, 1]} : vector<12x8x8xf32> to vector<4x8x8xf32>
    %c0_26 = arith.constant 0 : index
    %c0_27 = arith.constant 0 : index
    %c0_28 = arith.constant 0 : index
    %c0_29 = arith.constant 0 : index
    %44 = vector.load %arg6[%c0_26, %c0_27, %c0_28, %c0_29] : memref<2x4x1x8xf32, #tpu.memory_space<vmem>>, vector<1x4x1x8xf32>
    %45 = vector.shape_cast %44 : vector<1x4x1x8xf32> to vector<4x1x8xf32>
    %46 = vector.broadcast %45 : vector<4x1x8xf32> to vector<4x8x8xf32>
    %47 = arith.addf %43, %46 : vector<4x8x8xf32>
    %48 = arith.truncf %41 : vector<4x8x8xf32> to vector<4x8x8xbf16>
    %49 = arith.truncf %42 : vector<4x8x8xf32> to vector<4x8x8xbf16>
    "tpu.trace_start"() <{level = 10 : i32, message = "hqd,hkd->hqk"}> : () -> ()
    %cst_30 = arith.constant dense<0.000000e+00> : vector<4x8x8xf32>
    %50 = tpu.matmul %48, %49, %cst_30 {dimension_numbers = #tpu.dot_dimension_numbers<[2], [2], [1], [1], [0, 0, 0, 1, 1, 1], [0], [0]>} : vector<4x8x8xbf16>, vector<4x8x8xbf16>, vector<4x8x8xf32> -> vector<4x8x8xf32>
    "tpu.trace_stop"() : () -> ()
    %c0_31 = arith.constant 0 : index
    %c0_32 = arith.constant 0 : index
    %c0_33 = arith.constant 0 : index
    %c0_34 = arith.constant 0 : index
    %51 = vector.load %arg7[%c0_31, %c0_32, %c0_33, %c0_34] : memref<2x4x8x8xf32, #tpu.memory_space<vmem>>, vector<1x4x8x8xf32>
    %52 = vector.shape_cast %51 : vector<1x4x8x8xf32> to vector<4x8x8xf32>
    %53 = arith.addf %50, %52 : vector<4x8x8xf32>
    %cst_35 = arith.constant dense<0xFF800000> : vector<4x8xf32>
    %54 = vector.multi_reduction <maximumf>, %53, %cst_35 [2] : vector<4x8x8xf32> to vector<4x8xf32>
    %55 = vector.shape_cast %54 : vector<4x8xf32> to vector<4x8x1xf32>
    %56 = vector.broadcast %55 : vector<4x8x1xf32> to vector<4x8x8xf32>
    %57 = arith.subf %53, %56 : vector<4x8x8xf32>
    %58 = math.exp %57 : vector<4x8x8xf32>
    %cst_36 = arith.constant dense<0.000000e+00> : vector<4x8xf32>
    %59 = vector.multi_reduction <add>, %58, %cst_36 [2] : vector<4x8x8xf32> to vector<4x8xf32>
    %60 = vector.shape_cast %59 : vector<4x8xf32> to vector<4x8x1xf32>
    %61 = tpu.reciprocal %60 {approx = true} : vector<4x8x1xf32> -> vector<4x8x1xf32>
    %62 = vector.broadcast %61 : vector<4x8x1xf32> to vector<4x8x8xf32>
    %63 = arith.mulf %58, %62 : vector<4x8x8xf32>
    %64 = arith.truncf %63 : vector<4x8x8xf32> to vector<4x8x8xbf16>
    %65 = arith.truncf %47 : vector<4x8x8xf32> to vector<4x8x8xbf16>
    "tpu.trace_start"() <{level = 10 : i32, message = "hqk,hkd->hqd"}> : () -> ()
    %cst_37 = arith.constant dense<0.000000e+00> : vector<4x8x8xf32>
    %66 = tpu.matmul %64, %65, %cst_37 {dimension_numbers = #tpu.dot_dimension_numbers<[2], [1], [1], [2], [0, 0, 0, 1, 1, 2], [0], [0]>} : vector<4x8x8xbf16>, vector<4x8x8xbf16>, vector<4x8x8xf32> -> vector<4x8x8xf32>
    "tpu.trace_stop"() : () -> ()
    %67 = arith.truncf %66 : vector<4x8x8xf32> to vector<4x8x8xbf16>
    %c0_38 = arith.constant 0 : index
    %c0_39 = arith.constant 0 : index
    %c0_40 = arith.constant 0 : index
    %c0_41 = arith.constant 0 : index
    %68 = vector.load %arg8[%c0_38, %c0_39, %c0_40, %c0_41] : memref<2x4x8x32xbf16, #tpu.memory_space<vmem>>, vector<1x4x8x32xbf16>
    %69 = vector.shape_cast %68 : vector<1x4x8x32xbf16> to vector<4x8x32xbf16>
    "tpu.trace_start"() <{level = 10 : i32, message = "hqd,hde->hqe"}> : () -> ()
    %cst_42 = arith.constant dense<0.000000e+00> : vector<4x8x32xf32>
    %70 = tpu.matmul %67, %69, %cst_42 {dimension_numbers = #tpu.dot_dimension_numbers<[2], [1], [1], [2], [0, 0, 0, 1, 1, 2], [0], [0]>} : vector<4x8x8xbf16>, vector<4x8x32xbf16>, vector<4x8x32xf32> -> vector<4x8x32xf32>
    "tpu.trace_stop"() : () -> ()
    %cst_43 = arith.constant dense<0.000000e+00> : vector<8x32xf32>
    %71 = vector.multi_reduction <add>, %70, %cst_43 [0] : vector<4x8x32xf32> to vector<8x32xf32>
    %c0_44 = arith.constant 0 : index
    %c0_45 = arith.constant 0 : index
    %c0_46 = arith.constant 0 : index
    %72 = vector.load %arg12[%c0_44, %c0_45, %c0_46] : memref<2x1x32xf32, #tpu.memory_space<vmem>>, vector<1x1x32xf32>
    %73 = vector.shape_cast %72 : vector<1x1x32xf32> to vector<1x32xf32>
    %c0_47 = arith.constant 0 : index
    %c0_48 = arith.constant 0 : index
    %c0_49 = arith.constant 0 : index
    %74 = vector.load %arg9[%c0_47, %c0_48, %c0_49] : memref<2x1x32xf32, #tpu.memory_space<vmem>>, vector<1x1x32xf32>
    %75 = vector.shape_cast %74 : vector<1x1x32xf32> to vector<1x32xf32>
    %76 = vector.broadcast %75 : vector<1x32xf32> to vector<8x32xf32>
    %77 = arith.addf %71, %76 : vector<8x32xf32>
    %78 = vector.broadcast %73 : vector<1x32xf32> to vector<8x32xf32>
    %79 = arith.mulf %78, %77 : vector<8x32xf32>
    %80 = arith.addf %5, %79 : vector<8x32xf32>
    %c0_50 = arith.constant 0 : index
    %c0_51 = arith.constant 0 : index
    %c0_52 = arith.constant 0 : index
    %81 = vector.load %arg13[%c0_50, %c0_51, %c0_52] : memref<2x1x32xf32, #tpu.memory_space<vmem>>, vector<1x1x32xf32>
    %82 = vector.shape_cast %81 : vector<1x1x32xf32> to vector<1x32xf32>
    %c0_53 = arith.constant 0 : index
    %c0_54 = arith.constant 0 : index
    %c0_55 = arith.constant 0 : index
    %83 = vector.load %arg14[%c0_53, %c0_54, %c0_55] : memref<2x1x32xf32, #tpu.memory_space<vmem>>, vector<1x1x32xf32>
    %84 = vector.shape_cast %83 : vector<1x1x32xf32> to vector<1x32xf32>
    %cst_56 = arith.constant dense<0.000000e+00> : vector<8xf32>
    %85 = vector.multi_reduction <add>, %80, %cst_56 [1] : vector<8x32xf32> to vector<8xf32>
    %86 = vector.shape_cast %85 : vector<8xf32> to vector<8x1xf32>
    %cst_57 = arith.constant 3.200000e+01 : f32
    %87 = vector.broadcast %cst_57 : f32 to vector<8x1xf32>
    %88 = arith.divf %86, %87 : vector<8x1xf32>
    %89 = vector.broadcast %88 : vector<8x1xf32> to vector<8x32xf32>
    %90 = arith.subf %80, %89 : vector<8x32xf32>
    %91 = arith.mulf %90, %90 : vector<8x32xf32>
    %cst_58 = arith.constant dense<0.000000e+00> : vector<8xf32>
    %92 = vector.multi_reduction <add>, %91, %cst_58 [1] : vector<8x32xf32> to vector<8xf32>
    %93 = vector.shape_cast %92 : vector<8xf32> to vector<8x1xf32>
    %cst_59 = arith.constant 3.200000e+01 : f32
    %94 = vector.broadcast %cst_59 : f32 to vector<8x1xf32>
    %95 = arith.divf %93, %94 : vector<8x1xf32>
    %cst_60 = arith.constant 9.99999997E-7 : f32
    %96 = vector.broadcast %cst_60 : f32 to vector<8x1xf32>
    %97 = arith.addf %95, %96 : vector<8x1xf32>
    %98 = math.rsqrt %97 : vector<8x1xf32>
    %99 = vector.broadcast %98 : vector<8x1xf32> to vector<8x32xf32>
    %100 = arith.mulf %90, %99 : vector<8x32xf32>
    %101 = vector.broadcast %82 : vector<1x32xf32> to vector<8x32xf32>
    %102 = arith.mulf %100, %101 : vector<8x32xf32>
    %103 = vector.broadcast %84 : vector<1x32xf32> to vector<8x32xf32>
    %104 = arith.addf %102, %103 : vector<8x32xf32>
    %105 = arith.truncf %104 : vector<8x32xf32> to vector<8x32xbf16>
    %c0_61 = arith.constant 0 : index
    %c0_62 = arith.constant 0 : index
    %c0_63 = arith.constant 0 : index
    %106 = vector.load %arg15[%c0_61, %c0_62, %c0_63] : memref<2x32x128xbf16, #tpu.memory_space<vmem>>, vector<1x32x128xbf16>
    %107 = vector.shape_cast %106 : vector<1x32x128xbf16> to vector<32x128xbf16>
    %cst_64 = arith.constant dense<0.000000e+00> : vector<8x128xf32>
    %108 = tpu.matmul %105, %107, %cst_64 {dimension_numbers = #tpu.dot_dimension_numbers<[1], [0], [0], [1], [0, 0, 1, 1], [], []>} : vector<8x32xbf16>, vector<32x128xbf16>, vector<8x128xf32> -> vector<8x128xf32>
    %c0_65 = arith.constant 0 : index
    %c0_66 = arith.constant 0 : index
    %c0_67 = arith.constant 0 : index
    %109 = vector.load %arg16[%c0_65, %c0_66, %c0_67] : memref<2x1x128xf32, #tpu.memory_space<vmem>>, vector<1x1x128xf32>
    %110 = vector.shape_cast %109 : vector<1x1x128xf32> to vector<1x128xf32>
    %111 = vector.broadcast %110 : vector<1x128xf32> to vector<8x128xf32>
    %112 = arith.addf %108, %111 : vector<8x128xf32>
    %113 = arith.mulf %112, %112 : vector<8x128xf32>
    %114 = arith.mulf %112, %113 : vector<8x128xf32>
    %cst_68 = arith.constant 4.471500e-02 : f32
    %115 = vector.broadcast %cst_68 : f32 to vector<8x128xf32>
    %116 = arith.mulf %115, %114 : vector<8x128xf32>
    %117 = arith.addf %112, %116 : vector<8x128xf32>
    %cst_69 = arith.constant 0.797884583 : f32
    %118 = vector.broadcast %cst_69 : f32 to vector<8x128xf32>
    %119 = arith.mulf %118, %117 : vector<8x128xf32>
    %120 = math.tanh %119 : vector<8x128xf32>
    %cst_70 = arith.constant 1.000000e+00 : f32
    %121 = vector.broadcast %cst_70 : f32 to vector<8x128xf32>
    %122 = arith.addf %121, %120 : vector<8x128xf32>
    %cst_71 = arith.constant 5.000000e-01 : f32
    %123 = vector.broadcast %cst_71 : f32 to vector<8x128xf32>
    %124 = arith.mulf %123, %122 : vector<8x128xf32>
    %125 = arith.mulf %112, %124 : vector<8x128xf32>
    %126 = arith.truncf %125 : vector<8x128xf32> to vector<8x128xbf16>
    %c0_72 = arith.constant 0 : index
    %c0_73 = arith.constant 0 : index
    %c0_74 = arith.constant 0 : index
    %127 = vector.load %arg17[%c0_72, %c0_73, %c0_74] : memref<2x128x32xbf16, #tpu.memory_space<vmem>>, vector<1x128x32xbf16>
    %128 = vector.shape_cast %127 : vector<1x128x32xbf16> to vector<128x32xbf16>
    %cst_75 = arith.constant dense<0.000000e+00> : vector<8x32xf32>
    %129 = tpu.matmul %126, %128, %cst_75 {dimension_numbers = #tpu.dot_dimension_numbers<[1], [0], [0], [1], [0, 0, 1, 1], [], []>} : vector<8x128xbf16>, vector<128x32xbf16>, vector<8x32xf32> -> vector<8x32xf32>
    %c0_76 = arith.constant 0 : index
    %c0_77 = arith.constant 0 : index
    %c0_78 = arith.constant 0 : index
    %130 = vector.load %arg18[%c0_76, %c0_77, %c0_78] : memref<2x1x32xf32, #tpu.memory_space<vmem>>, vector<1x1x32xf32>
    %131 = vector.shape_cast %130 : vector<1x1x32xf32> to vector<1x32xf32>
    %132 = vector.broadcast %131 : vector<1x32xf32> to vector<8x32xf32>
    %133 = arith.addf %129, %132 : vector<8x32xf32>
    %c0_79 = arith.constant 0 : index
    %c0_80 = arith.constant 0 : index
    %c0_81 = arith.constant 0 : index
    %134 = vector.load %arg19[%c0_79, %c0_80, %c0_81] : memref<2x1x32xf32, #tpu.memory_space<vmem>>, vector<1x1x32xf32>
    %135 = vector.shape_cast %134 : vector<1x1x32xf32> to vector<1x32xf32>
    %136 = vector.broadcast %135 : vector<1x32xf32> to vector<8x32xf32>
    %137 = arith.mulf %136, %133 : vector<8x32xf32>
    %138 = arith.addf %80, %137 : vector<8x32xf32>
    %c1 = arith.constant 1 : index
    %c0_82 = arith.constant 0 : index
    %c0_83 = arith.constant 0 : index
    %139 = vector.load %arg10[%c1, %c0_82, %c0_83] : memref<2x1x32xf32, #tpu.memory_space<vmem>>, vector<1x1x32xf32>
    %140 = vector.shape_cast %139 : vector<1x1x32xf32> to vector<1x32xf32>
    %c1_84 = arith.constant 1 : index
    %c0_85 = arith.constant 0 : index
    %c0_86 = arith.constant 0 : index
    %141 = vector.load %arg11[%c1_84, %c0_85, %c0_86] : memref<2x1x32xf32, #tpu.memory_space<vmem>>, vector<1x1x32xf32>
    %142 = vector.shape_cast %141 : vector<1x1x32xf32> to vector<1x32xf32>
    %cst_87 = arith.constant dense<0.000000e+00> : vector<8xf32>
    %143 = vector.multi_reduction <add>, %138, %cst_87 [1] : vector<8x32xf32> to vector<8xf32>
    %144 = vector.shape_cast %143 : vector<8xf32> to vector<8x1xf32>
    %cst_88 = arith.constant 3.200000e+01 : f32
    %145 = vector.broadcast %cst_88 : f32 to vector<8x1xf32>
    %146 = arith.divf %144, %145 : vector<8x1xf32>
    %147 = vector.broadcast %146 : vector<8x1xf32> to vector<8x32xf32>
    %148 = arith.subf %138, %147 : vector<8x32xf32>
    %149 = arith.mulf %148, %148 : vector<8x32xf32>
    %cst_89 = arith.constant dense<0.000000e+00> : vector<8xf32>
    %150 = vector.multi_reduction <add>, %149, %cst_89 [1] : vector<8x32xf32> to vector<8xf32>
    %151 = vector.shape_cast %150 : vector<8xf32> to vector<8x1xf32>
    %cst_90 = arith.constant 3.200000e+01 : f32
    %152 = vector.broadcast %cst_90 : f32 to vector<8x1xf32>
    %153 = arith.divf %151, %152 : vector<8x1xf32>
    %cst_91 = arith.constant 9.99999997E-7 : f32
    %154 = vector.broadcast %cst_91 : f32 to vector<8x1xf32>
    %155 = arith.addf %153, %154 : vector<8x1xf32>
    %156 = math.rsqrt %155 : vector<8x1xf32>
    %157 = vector.broadcast %156 : vector<8x1xf32> to vector<8x32xf32>
    %158 = arith.mulf %148, %157 : vector<8x32xf32>
    %159 = vector.broadcast %140 : vector<1x32xf32> to vector<8x32xf32>
    %160 = arith.mulf %158, %159 : vector<8x32xf32>
    %161 = vector.broadcast %142 : vector<1x32xf32> to vector<8x32xf32>
    %162 = arith.addf %160, %161 : vector<8x32xf32>
    %163 = arith.truncf %162 : vector<8x32xf32> to vector<8x32xbf16>
    %164 = vector.shape_cast %163 : vector<8x32xbf16> to vector<1x8x32xbf16>
    %165 = vector.shape_cast %164 : vector<1x8x32xbf16> to vector<1x8x32xbf16>
    %166 = vector.broadcast %165 : vector<1x8x32xbf16> to vector<12x8x32xbf16>
    %c1_92 = arith.constant 1 : index
    %c0_93 = arith.constant 0 : index
    %c0_94 = arith.constant 0 : index
    %c0_95 = arith.constant 0 : index
    %167 = vector.load %arg4[%c1_92, %c0_93, %c0_94, %c0_95] : memref<2x12x32x8xbf16, #tpu.memory_space<vmem>>, vector<1x12x32x8xbf16>
    %168 = vector.shape_cast %167 : vector<1x12x32x8xbf16> to vector<12x32x8xbf16>
    "tpu.trace_start"() <{level = 10 : i32, message = "gme,ged->gmd"}> : () -> ()
    %cst_96 = arith.constant dense<0.000000e+00> : vector<12x8x8xf32>
    %169 = tpu.matmul %166, %168, %cst_96 {dimension_numbers = #tpu.dot_dimension_numbers<[2], [1], [1], [2], [0, 0, 0, 1, 1, 2], [0], [0]>} : vector<12x8x32xbf16>, vector<12x32x8xbf16>, vector<12x8x8xf32> -> vector<12x8x8xf32>
    "tpu.trace_stop"() : () -> ()
    %170 = vector.extract_strided_slice %169 {offsets = [0, 0, 0], sizes = [4, 8, 8], strides = [1, 1, 1]} : vector<12x8x8xf32> to vector<4x8x8xf32>
    %c1_97 = arith.constant 1 : index
    %c0_98 = arith.constant 0 : index
    %c0_99 = arith.constant 0 : index
    %c0_100 = arith.constant 0 : index
    %171 = vector.load %arg5[%c1_97, %c0_98, %c0_99, %c0_100] : memref<2x4x1x8xf32, #tpu.memory_space<vmem>>, vector<1x4x1x8xf32>
    %172 = vector.shape_cast %171 : vector<1x4x1x8xf32> to vector<4x1x8xf32>
    %173 = vector.broadcast %172 : vector<4x1x8xf32> to vector<4x8x8xf32>
    %174 = arith.addf %170, %173 : vector<4x8x8xf32>
    %175 = vector.extract_strided_slice %169 {offsets = [4, 0, 0], sizes = [4, 8, 8], strides = [1, 1, 1]} : vector<12x8x8xf32> to vector<4x8x8xf32>
    %176 = vector.extract_strided_slice %169 {offsets = [8, 0, 0], sizes = [4, 8, 8], strides = [1, 1, 1]} : vector<12x8x8xf32> to vector<4x8x8xf32>
    %c1_101 = arith.constant 1 : index
    %c0_102 = arith.constant 0 : index
    %c0_103 = arith.constant 0 : index
    %c0_104 = arith.constant 0 : index
    %177 = vector.load %arg6[%c1_101, %c0_102, %c0_103, %c0_104] : memref<2x4x1x8xf32, #tpu.memory_space<vmem>>, vector<1x4x1x8xf32>
    %178 = vector.shape_cast %177 : vector<1x4x1x8xf32> to vector<4x1x8xf32>
    %179 = vector.broadcast %178 : vector<4x1x8xf32> to vector<4x8x8xf32>
    %180 = arith.addf %176, %179 : vector<4x8x8xf32>
    %181 = arith.truncf %174 : vector<4x8x8xf32> to vector<4x8x8xbf16>
    %182 = arith.truncf %175 : vector<4x8x8xf32> to vector<4x8x8xbf16>
    "tpu.trace_start"() <{level = 10 : i32, message = "hqd,hkd->hqk"}> : () -> ()
    %cst_105 = arith.constant dense<0.000000e+00> : vector<4x8x8xf32>
    %183 = tpu.matmul %181, %182, %cst_105 {dimension_numbers = #tpu.dot_dimension_numbers<[2], [2], [1], [1], [0, 0, 0, 1, 1, 1], [0], [0]>} : vector<4x8x8xbf16>, vector<4x8x8xbf16>, vector<4x8x8xf32> -> vector<4x8x8xf32>
    "tpu.trace_stop"() : () -> ()
    %c1_106 = arith.constant 1 : index
    %c0_107 = arith.constant 0 : index
    %c0_108 = arith.constant 0 : index
    %c0_109 = arith.constant 0 : index
    %184 = vector.load %arg7[%c1_106, %c0_107, %c0_108, %c0_109] : memref<2x4x8x8xf32, #tpu.memory_space<vmem>>, vector<1x4x8x8xf32>
    %185 = vector.shape_cast %184 : vector<1x4x8x8xf32> to vector<4x8x8xf32>
    %186 = arith.addf %183, %185 : vector<4x8x8xf32>
    %cst_110 = arith.constant dense<0xFF800000> : vector<4x8xf32>
    %187 = vector.multi_reduction <maximumf>, %186, %cst_110 [2] : vector<4x8x8xf32> to vector<4x8xf32>
    %188 = vector.shape_cast %187 : vector<4x8xf32> to vector<4x8x1xf32>
    %189 = vector.broadcast %188 : vector<4x8x1xf32> to vector<4x8x8xf32>
    %190 = arith.subf %186, %189 : vector<4x8x8xf32>
    %191 = math.exp %190 : vector<4x8x8xf32>
    %cst_111 = arith.constant dense<0.000000e+00> : vector<4x8xf32>
    %192 = vector.multi_reduction <add>, %191, %cst_111 [2] : vector<4x8x8xf32> to vector<4x8xf32>
    %193 = vector.shape_cast %192 : vector<4x8xf32> to vector<4x8x1xf32>
    %194 = tpu.reciprocal %193 {approx = true} : vector<4x8x1xf32> -> vector<4x8x1xf32>
    %195 = vector.broadcast %194 : vector<4x8x1xf32> to vector<4x8x8xf32>
    %196 = arith.mulf %191, %195 : vector<4x8x8xf32>
    %197 = arith.truncf %196 : vector<4x8x8xf32> to vector<4x8x8xbf16>
    %198 = arith.truncf %180 : vector<4x8x8xf32> to vector<4x8x8xbf16>
    "tpu.trace_start"() <{level = 10 : i32, message = "hqk,hkd->hqd"}> : () -> ()
    %cst_112 = arith.constant dense<0.000000e+00> : vector<4x8x8xf32>
    %199 = tpu.matmul %197, %198, %cst_112 {dimension_numbers = #tpu.dot_dimension_numbers<[2], [1], [1], [2], [0, 0, 0, 1, 1, 2], [0], [0]>} : vector<4x8x8xbf16>, vector<4x8x8xbf16>, vector<4x8x8xf32> -> vector<4x8x8xf32>
    "tpu.trace_stop"() : () -> ()
    %200 = arith.truncf %199 : vector<4x8x8xf32> to vector<4x8x8xbf16>
    %c1_113 = arith.constant 1 : index
    %c0_114 = arith.constant 0 : index
    %c0_115 = arith.constant 0 : index
    %c0_116 = arith.constant 0 : index
    %201 = vector.load %arg8[%c1_113, %c0_114, %c0_115, %c0_116] : memref<2x4x8x32xbf16, #tpu.memory_space<vmem>>, vector<1x4x8x32xbf16>
    %202 = vector.shape_cast %201 : vector<1x4x8x32xbf16> to vector<4x8x32xbf16>
    "tpu.trace_start"() <{level = 10 : i32, message = "hqd,hde->hqe"}> : () -> ()
    %cst_117 = arith.constant dense<0.000000e+00> : vector<4x8x32xf32>
    %203 = tpu.matmul %200, %202, %cst_117 {dimension_numbers = #tpu.dot_dimension_numbers<[2], [1], [1], [2], [0, 0, 0, 1, 1, 2], [0], [0]>} : vector<4x8x8xbf16>, vector<4x8x32xbf16>, vector<4x8x32xf32> -> vector<4x8x32xf32>
    "tpu.trace_stop"() : () -> ()
    %cst_118 = arith.constant dense<0.000000e+00> : vector<8x32xf32>
    %204 = vector.multi_reduction <add>, %203, %cst_118 [0] : vector<4x8x32xf32> to vector<8x32xf32>
    %c1_119 = arith.constant 1 : index
    %c0_120 = arith.constant 0 : index
    %c0_121 = arith.constant 0 : index
    %205 = vector.load %arg12[%c1_119, %c0_120, %c0_121] : memref<2x1x32xf32, #tpu.memory_space<vmem>>, vector<1x1x32xf32>
    %206 = vector.shape_cast %205 : vector<1x1x32xf32> to vector<1x32xf32>
    %c1_122 = arith.constant 1 : index
    %c0_123 = arith.constant 0 : index
    %c0_124 = arith.constant 0 : index
    %207 = vector.load %arg9[%c1_122, %c0_123, %c0_124] : memref<2x1x32xf32, #tpu.memory_space<vmem>>, vector<1x1x32xf32>
    %208 = vector.shape_cast %207 : vector<1x1x32xf32> to vector<1x32xf32>
    %209 = vector.broadcast %208 : vector<1x32xf32> to vector<8x32xf32>
    %210 = arith.addf %204, %209 : vector<8x32xf32>
    %211 = vector.broadcast %206 : vector<1x32xf32> to vector<8x32xf32>
    %212 = arith.mulf %211, %210 : vector<8x32xf32>
    %213 = arith.addf %138, %212 : vector<8x32xf32>
    %c1_125 = arith.constant 1 : index
    %c0_126 = arith.constant 0 : index
    %c0_127 = arith.constant 0 : index
    %214 = vector.load %arg13[%c1_125, %c0_126, %c0_127] : memref<2x1x32xf32, #tpu.memory_space<vmem>>, vector<1x1x32xf32>
    %215 = vector.shape_cast %214 : vector<1x1x32xf32> to vector<1x32xf32>
    %c1_128 = arith.constant 1 : index
    %c0_129 = arith.constant 0 : index
    %c0_130 = arith.constant 0 : index
    %216 = vector.load %arg14[%c1_128, %c0_129, %c0_130] : memref<2x1x32xf32, #tpu.memory_space<vmem>>, vector<1x1x32xf32>
    %217 = vector.shape_cast %216 : vector<1x1x32xf32> to vector<1x32xf32>
    %cst_131 = arith.constant dense<0.000000e+00> : vector<8xf32>
    %218 = vector.multi_reduction <add>, %213, %cst_131 [1] : vector<8x32xf32> to vector<8xf32>
    %219 = vector.shape_cast %218 : vector<8xf32> to vector<8x1xf32>
    %cst_132 = arith.constant 3.200000e+01 : f32
    %220 = vector.broadcast %cst_132 : f32 to vector<8x1xf32>
    %221 = arith.divf %219, %220 : vector<8x1xf32>
    %222 = vector.broadcast %221 : vector<8x1xf32> to vector<8x32xf32>
    %223 = arith.subf %213, %222 : vector<8x32xf32>
    %224 = arith.mulf %223, %223 : vector<8x32xf32>
    %cst_133 = arith.constant dense<0.000000e+00> : vector<8xf32>
    %225 = vector.multi_reduction <add>, %224, %cst_133 [1] : vector<8x32xf32> to vector<8xf32>
    %226 = vector.shape_cast %225 : vector<8xf32> to vector<8x1xf32>
    %cst_134 = arith.constant 3.200000e+01 : f32
    %227 = vector.broadcast %cst_134 : f32 to vector<8x1xf32>
    %228 = arith.divf %226, %227 : vector<8x1xf32>
    %cst_135 = arith.constant 9.99999997E-7 : f32
    %229 = vector.broadcast %cst_135 : f32 to vector<8x1xf32>
    %230 = arith.addf %228, %229 : vector<8x1xf32>
    %231 = math.rsqrt %230 : vector<8x1xf32>
    %232 = vector.broadcast %231 : vector<8x1xf32> to vector<8x32xf32>
    %233 = arith.mulf %223, %232 : vector<8x32xf32>
    %234 = vector.broadcast %215 : vector<1x32xf32> to vector<8x32xf32>
    %235 = arith.mulf %233, %234 : vector<8x32xf32>
    %236 = vector.broadcast %217 : vector<1x32xf32> to vector<8x32xf32>
    %237 = arith.addf %235, %236 : vector<8x32xf32>
    %238 = arith.truncf %237 : vector<8x32xf32> to vector<8x32xbf16>
    %c1_136 = arith.constant 1 : index
    %c0_137 = arith.constant 0 : index
    %c0_138 = arith.constant 0 : index
    %239 = vector.load %arg15[%c1_136, %c0_137, %c0_138] : memref<2x32x128xbf16, #tpu.memory_space<vmem>>, vector<1x32x128xbf16>
    %240 = vector.shape_cast %239 : vector<1x32x128xbf16> to vector<32x128xbf16>
    %cst_139 = arith.constant dense<0.000000e+00> : vector<8x128xf32>
    %241 = tpu.matmul %238, %240, %cst_139 {dimension_numbers = #tpu.dot_dimension_numbers<[1], [0], [0], [1], [0, 0, 1, 1], [], []>} : vector<8x32xbf16>, vector<32x128xbf16>, vector<8x128xf32> -> vector<8x128xf32>
    %c1_140 = arith.constant 1 : index
    %c0_141 = arith.constant 0 : index
    %c0_142 = arith.constant 0 : index
    %242 = vector.load %arg16[%c1_140, %c0_141, %c0_142] : memref<2x1x128xf32, #tpu.memory_space<vmem>>, vector<1x1x128xf32>
    %243 = vector.shape_cast %242 : vector<1x1x128xf32> to vector<1x128xf32>
    %244 = vector.broadcast %243 : vector<1x128xf32> to vector<8x128xf32>
    %245 = arith.addf %241, %244 : vector<8x128xf32>
    %246 = arith.mulf %245, %245 : vector<8x128xf32>
    %247 = arith.mulf %245, %246 : vector<8x128xf32>
    %cst_143 = arith.constant 4.471500e-02 : f32
    %248 = vector.broadcast %cst_143 : f32 to vector<8x128xf32>
    %249 = arith.mulf %248, %247 : vector<8x128xf32>
    %250 = arith.addf %245, %249 : vector<8x128xf32>
    %cst_144 = arith.constant 0.797884583 : f32
    %251 = vector.broadcast %cst_144 : f32 to vector<8x128xf32>
    %252 = arith.mulf %251, %250 : vector<8x128xf32>
    %253 = math.tanh %252 : vector<8x128xf32>
    %cst_145 = arith.constant 1.000000e+00 : f32
    %254 = vector.broadcast %cst_145 : f32 to vector<8x128xf32>
    %255 = arith.addf %254, %253 : vector<8x128xf32>
    %cst_146 = arith.constant 5.000000e-01 : f32
    %256 = vector.broadcast %cst_146 : f32 to vector<8x128xf32>
    %257 = arith.mulf %256, %255 : vector<8x128xf32>
    %258 = arith.mulf %245, %257 : vector<8x128xf32>
    %259 = arith.truncf %258 : vector<8x128xf32> to vector<8x128xbf16>
    %c1_147 = arith.constant 1 : index
    %c0_148 = arith.constant 0 : index
    %c0_149 = arith.constant 0 : index
    %260 = vector.load %arg17[%c1_147, %c0_148, %c0_149] : memref<2x128x32xbf16, #tpu.memory_space<vmem>>, vector<1x128x32xbf16>
    %261 = vector.shape_cast %260 : vector<1x128x32xbf16> to vector<128x32xbf16>
    %cst_150 = arith.constant dense<0.000000e+00> : vector<8x32xf32>
    %262 = tpu.matmul %259, %261, %cst_150 {dimension_numbers = #tpu.dot_dimension_numbers<[1], [0], [0], [1], [0, 0, 1, 1], [], []>} : vector<8x128xbf16>, vector<128x32xbf16>, vector<8x32xf32> -> vector<8x32xf32>
    %c1_151 = arith.constant 1 : index
    %c0_152 = arith.constant 0 : index
    %c0_153 = arith.constant 0 : index
    %263 = vector.load %arg18[%c1_151, %c0_152, %c0_153] : memref<2x1x32xf32, #tpu.memory_space<vmem>>, vector<1x1x32xf32>
    %264 = vector.shape_cast %263 : vector<1x1x32xf32> to vector<1x32xf32>
    %265 = vector.broadcast %264 : vector<1x32xf32> to vector<8x32xf32>
    %266 = arith.addf %262, %265 : vector<8x32xf32>
    %c1_154 = arith.constant 1 : index
    %c0_155 = arith.constant 0 : index
    %c0_156 = arith.constant 0 : index
    %267 = vector.load %arg19[%c1_154, %c0_155, %c0_156] : memref<2x1x32xf32, #tpu.memory_space<vmem>>, vector<1x1x32xf32>
    %268 = vector.shape_cast %267 : vector<1x1x32xf32> to vector<1x32xf32>
    %269 = vector.broadcast %268 : vector<1x32xf32> to vector<8x32xf32>
    %270 = arith.mulf %269, %266 : vector<8x32xf32>
    %271 = arith.addf %213, %270 : vector<8x32xf32>
    %c0_157 = arith.constant 0 : index
    %c0_158 = arith.constant 0 : index
    %272 = vector.load %arg20[%c0_157, %c0_158] : memref<1x32xf32, #tpu.memory_space<vmem>>, vector<1x32xf32>
    %c0_159 = arith.constant 0 : index
    %c0_160 = arith.constant 0 : index
    %273 = vector.load %arg21[%c0_159, %c0_160] : memref<1x32xf32, #tpu.memory_space<vmem>>, vector<1x32xf32>
    %cst_161 = arith.constant dense<0.000000e+00> : vector<8xf32>
    %274 = vector.multi_reduction <add>, %271, %cst_161 [1] : vector<8x32xf32> to vector<8xf32>
    %275 = vector.shape_cast %274 : vector<8xf32> to vector<8x1xf32>
    %cst_162 = arith.constant 3.200000e+01 : f32
    %276 = vector.broadcast %cst_162 : f32 to vector<8x1xf32>
    %277 = arith.divf %275, %276 : vector<8x1xf32>
    %278 = vector.broadcast %277 : vector<8x1xf32> to vector<8x32xf32>
    %279 = arith.subf %271, %278 : vector<8x32xf32>
    %280 = arith.mulf %279, %279 : vector<8x32xf32>
    %cst_163 = arith.constant dense<0.000000e+00> : vector<8xf32>
    %281 = vector.multi_reduction <add>, %280, %cst_163 [1] : vector<8x32xf32> to vector<8xf32>
    %282 = vector.shape_cast %281 : vector<8xf32> to vector<8x1xf32>
    %cst_164 = arith.constant 3.200000e+01 : f32
    %283 = vector.broadcast %cst_164 : f32 to vector<8x1xf32>
    %284 = arith.divf %282, %283 : vector<8x1xf32>
    %cst_165 = arith.constant 9.99999997E-7 : f32
    %285 = vector.broadcast %cst_165 : f32 to vector<8x1xf32>
    %286 = arith.addf %284, %285 : vector<8x1xf32>
    %287 = math.rsqrt %286 : vector<8x1xf32>
    %288 = vector.broadcast %287 : vector<8x1xf32> to vector<8x32xf32>
    %289 = arith.mulf %279, %288 : vector<8x32xf32>
    %290 = vector.broadcast %272 : vector<1x32xf32> to vector<8x32xf32>
    %291 = arith.mulf %289, %290 : vector<8x32xf32>
    %292 = vector.broadcast %273 : vector<1x32xf32> to vector<8x32xf32>
    %293 = arith.addf %291, %292 : vector<8x32xf32>
    %c0_166 = arith.constant 0 : index
    %c0_167 = arith.constant 0 : index
    %c0_168 = arith.constant 0 : index
    %294 = vector.load %arg22[%c0_166, %c0_167, %c0_168] : memref<1x8x32xf32, #tpu.memory_space<vmem>>, vector<1x8x32xf32>
    %295 = vector.shape_cast %294 : vector<1x8x32xf32> to vector<8x32xf32>
    %296 = vector.shape_cast %293 : vector<8x32xf32> to vector<1x8x32xf32>
    tpu.vector_store %arg22[%c0_166, %c0_167, %c0_168], %296 {strides = array<i32>} : memref<1x8x32xf32, #tpu.memory_space<vmem>>, vector<1x8x32xf32>,
    return
  }
  func.func @transform_0(%arg0: i32) -> (i32, i32, i32) {
    %c0_i32 = arith.constant 0 : i32
    %c0_i32_0 = arith.constant 0 : i32
    %c0_i32_1 = arith.constant 0 : i32
    return %arg0, %c0_i32, %c0_i32_0 : i32, i32, i32
  }
  func.func @transform_1(%arg0: i32) -> (i32, i32) {
    %c0_i32 = arith.constant 0 : i32
    %c0_i32_0 = arith.constant 0 : i32
    %c0_i32_1 = arith.constant 0 : i32
    return %c0_i32, %c0_i32_0 : i32, i32
  }
  func.func @transform_2(%arg0: i32) -> (i32, i32) {
    %c0_i32 = arith.constant 0 : i32
    %c0_i32_0 = arith.constant 0 : i32
    %c0_i32_1 = arith.constant 0 : i32
    return %c0_i32, %c0_i32_0 : i32, i32
  }
  func.func @transform_3(%arg0: i32) -> (i32, i32, i32, i32) {
    %c0_i32 = arith.constant 0 : i32
    %c0_i32_0 = arith.constant 0 : i32
    %c0_i32_1 = arith.constant 0 : i32
    %c0_i32_2 = arith.constant 0 : i32
    %c0_i32_3 = arith.constant 0 : i32
    return %c0_i32, %c0_i32_0, %c0_i32_1, %c0_i32_2 : i32, i32, i32, i32
  }
  func.func @transform_4(%arg0: i32) -> (i32, i32, i32, i32) {
    %c0_i32 = arith.constant 0 : i32
    %c0_i32_0 = arith.constant 0 : i32
    %c0_i32_1 = arith.constant 0 : i32
    %c0_i32_2 = arith.constant 0 : i32
    %c0_i32_3 = arith.constant 0 : i32
    return %c0_i32, %c0_i32_0, %c0_i32_1, %c0_i32_2 : i32, i32, i32, i32
  }
  func.func @transform_5(%arg0: i32) -> (i32, i32, i32, i32) {
    %c0_i32 = arith.constant 0 : i32
    %c0_i32_0 = arith.constant 0 : i32
    %c0_i32_1 = arith.constant 0 : i32
    %c0_i32_2 = arith.constant 0 : i32
    %c0_i32_3 = arith.constant 0 : i32
    return %c0_i32, %c0_i32_0, %c0_i32_1, %c0_i32_2 : i32, i32, i32, i32
  }
  func.func @transform_6(%arg0: i32) -> (i32, i32, i32, i32) {
    %c0_i32 = arith.constant 0 : i32
    %c0_i32_0 = arith.constant 0 : i32
    %c0_i32_1 = arith.constant 0 : i32
    %c0_i32_2 = arith.constant 0 : i32
    %c0_i32_3 = arith.constant 0 : i32
    return %c0_i32, %c0_i32_0, %c0_i32_1, %c0_i32_2 : i32, i32, i32, i32
  }
  func.func @transform_7(%arg0: i32) -> (i32, i32, i32, i32) {
    %c0_i32 = arith.constant 0 : i32
    %c0_i32_0 = arith.constant 0 : i32
    %c0_i32_1 = arith.constant 0 : i32
    %c0_i32_2 = arith.constant 0 : i32
    %c0_i32_3 = arith.constant 0 : i32
    return %c0_i32, %c0_i32_0, %c0_i32_1, %c0_i32_2 : i32, i32, i32, i32
  }
  func.func @transform_8(%arg0: i32) -> (i32, i32, i32) {
    %c0_i32 = arith.constant 0 : i32
    %c0_i32_0 = arith.constant 0 : i32
    %c0_i32_1 = arith.constant 0 : i32
    %c0_i32_2 = arith.constant 0 : i32
    return %c0_i32, %c0_i32_0, %c0_i32_1 : i32, i32, i32
  }
  func.func @transform_9(%arg0: i32) -> (i32, i32, i32) {
    %c0_i32 = arith.constant 0 : i32
    %c0_i32_0 = arith.constant 0 : i32
    %c0_i32_1 = arith.constant 0 : i32
    %c0_i32_2 = arith.constant 0 : i32
    return %c0_i32, %c0_i32_0, %c0_i32_1 : i32, i32, i32
  }
  func.func @transform_10(%arg0: i32) -> (i32, i32, i32) {
    %c0_i32 = arith.constant 0 : i32
    %c0_i32_0 = arith.constant 0 : i32
    %c0_i32_1 = arith.constant 0 : i32
    %c0_i32_2 = arith.constant 0 : i32
    return %c0_i32, %c0_i32_0, %c0_i32_1 : i32, i32, i32
  }
  func.func @transform_11(%arg0: i32) -> (i32, i32, i32) {
    %c0_i32 = arith.constant 0 : i32
    %c0_i32_0 = arith.constant 0 : i32
    %c0_i32_1 = arith.constant 0 : i32
    %c0_i32_2 = arith.constant 0 : i32
    return %c0_i32, %c0_i32_0, %c0_i32_1 : i32, i32, i32
  }
  func.func @transform_12(%arg0: i32) -> (i32, i32, i32) {
    %c0_i32 = arith.constant 0 : i32
    %c0_i32_0 = arith.constant 0 : i32
    %c0_i32_1 = arith.constant 0 : i32
    %c0_i32_2 = arith.constant 0 : i32
    return %c0_i32, %c0_i32_0, %c0_i32_1 : i32, i32, i32
  }
  func.func @transform_13(%arg0: i32) -> (i32, i32, i32) {
    %c0_i32 = arith.constant 0 : i32
    %c0_i32_0 = arith.constant 0 : i32
    %c0_i32_1 = arith.constant 0 : i32
    %c0_i32_2 = arith.constant 0 : i32
    return %c0_i32, %c0_i32_0, %c0_i32_1 : i32, i32, i32
  }
  func.func @transform_14(%arg0: i32) -> (i32, i32, i32) {
    %c0_i32 = arith.constant 0 : i32
    %c0_i32_0 = arith.constant 0 : i32
    %c0_i32_1 = arith.constant 0 : i32
    %c0_i32_2 = arith.constant 0 : i32
    return %c0_i32, %c0_i32_0, %c0_i32_1 : i32, i32, i32
  }
  func.func @transform_15(%arg0: i32) -> (i32, i32, i32) {
    %c0_i32 = arith.constant 0 : i32
    %c0_i32_0 = arith.constant 0 : i32
    %c0_i32_1 = arith.constant 0 : i32
    %c0_i32_2 = arith.constant 0 : i32
    return %c0_i32, %c0_i32_0, %c0_i32_1 : i32, i32, i32
  }
  func.func @transform_16(%arg0: i32) -> (i32, i32, i32) {
    %c0_i32 = arith.constant 0 : i32
    %c0_i32_0 = arith.constant 0 : i32
    %c0_i32_1 = arith.constant 0 : i32
    %c0_i32_2 = arith.constant 0 : i32
    return %c0_i32, %c0_i32_0, %c0_i32_1 : i32, i32, i32
  }
  func.func @transform_17(%arg0: i32) -> (i32, i32, i32) {
    %c0_i32 = arith.constant 0 : i32
    %c0_i32_0 = arith.constant 0 : i32
    %c0_i32_1 = arith.constant 0 : i32
    %c0_i32_2 = arith.constant 0 : i32
    return %c0_i32, %c0_i32_0, %c0_i32_1 : i32, i32, i32
  }
  func.func @transform_18(%arg0: i32) -> (i32, i32, i32) {
    %c0_i32 = arith.constant 0 : i32
    %c0_i32_0 = arith.constant 0 : i32
    %c0_i32_1 = arith.constant 0 : i32
    %c0_i32_2 = arith.constant 0 : i32
    return %c0_i32, %c0_i32_0, %c0_i32_1 : i32, i32, i32
  }
  func.func @transform_19(%arg0: i32) -> (i32, i32) {
    %c0_i32 = arith.constant 0 : i32
    %c0_i32_0 = arith.constant 0 : i32
    %c0_i32_1 = arith.constant 0 : i32
    return %c0_i32, %c0_i32_0 : i32, i32
  }
  func.func @transform_20(%arg0: i32) -> (i32, i32) {
    %c0_i32 = arith.constant 0 : i32
    %c0_i32_0 = arith.constant 0 : i32
    %c0_i32_1 = arith.constant 0 : i32
    return %c0_i32, %c0_i32_0 : i32, i32
  }
  func.func @transform_21(%arg0: i32) -> (i32, i32, i32) {
    %c0_i32 = arith.constant 0 : i32
    %c0_i32_0 = arith.constant 0 : i32
    %c0_i32_1 = arith.constant 0 : i32
    return %arg0, %c0_i32, %c0_i32_0 : i32, i32, i32
  }
}

</mosaic_0001>

<bundles_post_ra>
// kernel: encoder_beit_forward.1
= control target key start
LH: loop header
LB: loop body
LE: loop exit
PB: predicated region body
PF: predicated region fallthrough
CT: control target
= control target key end

     0   :  { %s6049_s0 = inlined_call_operand.vmem [shape: f32[2,8,192], index: 0, kind: input, shape index: {}]   ;;  %s6050_s1 = inlined_call_operand.vmem [shape: f32[8,32], index: 1, kind: input, shape index: {}]   ;;  %s6051_s2 = inlined_call_operand.vmem [shape: f32[192,32], index: 2, kind: input, shape index: {}]   ;;  %s6052_s3 = inlined_call_operand.vmem [shape: bf16[2,12,32,8], index: 3, kind: input, shape index: {}]   ;;  %s6053_s4 = inlined_call_operand.vmem [shape: f32[2,4,1,8], index: 4, kind: input, shape index: {}]   ;;  %s6054_s5 = inlined_call_operand.vmem [shape: f32[2,4,1,8], index: 5, kind: input, shape index: {}]   ;;  %s6055_s6 = inlined_call_operand.vmem [shape: f32[2,4,8,8], index: 6, kind: input, shape index: {}]   ;;  %s6056_s7 = inlined_call_operand.vmem [shape: bf16[2,4,8,32], index: 7, kind: input, shape index: {}]   ;;  %s6057_s8 = inlined_call_operand.vmem [shape: f32[2,1,32], index: 8, kind: input, shape index: {}]   ;;  %s6058_s9 = inlined_call_operand.vmem [shape: f32[2,1,32], index: 9, kind: input, shape index: {}]   ;;  %s6059_s10 = inlined_call_operand.vmem [shape: f32[2,1,32], index: 10, kind: input, shape index: {}]   ;;  %s6060_s11 = inlined_call_operand.vmem [shape: f32[2,1,32], index: 11, kind: input, shape index: {}]   ;;  %s6061_s12 = inlined_call_operand.vmem [shape: f32[2,1,32], index: 12, kind: input, shape index: {}]   ;;  %s6062_s13 = inlined_call_operand.vmem [shape: f32[2,1,32], index: 13, kind: input, shape index: {}]   ;;  %s6063_s14 = inlined_call_operand.vmem [shape: bf16[2,32,128], index: 14, kind: input, shape index: {}]   ;;  %s6064_s15 = inlined_call_operand.vmem [shape: f32[2,1,128], index: 15, kind: input, shape index: {}]   ;;  %s6065_s16 = inlined_call_operand.vmem [shape: bf16[2,128,32], index: 16, kind: input, shape index: {}]   ;;  %s6066_s17 = inlined_call_operand.vmem [shape: f32[2,1,32], index: 17, kind: input, shape index: {}]   ;;  %s6067_s18 = inlined_call_operand.vmem [shape: f32[2,1,32], index: 18, kind: input, shape index: {}]   ;;  %s6068_s19 = inlined_call_operand.vmem [shape: f32[1,32], index: 19, kind: input, shape index: {}]   ;;  %s6069_s20 = inlined_call_operand.vmem [shape: f32[1,32], index: 20, kind: input, shape index: {}]   ;;  %s6070_s21 = inlined_call_operand.vmem [shape: f32[2,8,32], index: 21, kind: output, shape index: {}]  }
   0x1   :  { %6075 = sst [smem:[#allocation2_spill]] %s6049_s0 }
   0x2   :  { %6076 = sst [smem:[#allocation3_spill]] %s6050_s1 }
   0x3   :  { %6077 = sst [smem:[#allocation4_spill]] %s6051_s2  ;;  %s5224_s2 = smov 0  }
   0x4   :  { %6078 = sst [smem:[#allocation5_spill]] %s6052_s3 }
   0x5   :  { %6079 = sst [smem:[#allocation6_spill]] %s6053_s4 }
   0x6   :  { %6080 = sst [smem:[#allocation7_spill]] %s6054_s5 }
   0x7 LB: > { %s4147_s25 = sadd.s32 4294967295, %s5109_s2   ;;  %p4151_p0 = scmp.ge.s32.totalorder %s5109_s2, 1  ;;  %s5109_s2 = sphi %s5224_s2, %s31_s2  }
   0x8   : > { %p587_p1 = scmp.lt.s32.totalorder %s5109_s2, 3 }
   0xa   : > { %p588_p2 = pnand %p4151_p0, %p587_p1 }
   0xb   : > { %s6081_s3 = sld [smem:[#allocation4_spill]] (!%p588_p2)  ;;  %p646_p3 = scmp.lt.s32.totalorder (!%p588_p2), %s4147_s25, 1  ;;  %v5111_v3 = vmov (!%p588_p2), 0.0|0.0   ;;  %vm683_vm0 = vcmask (!%p588_p2), 523264   ;;  %vm760_vm1 = vcmask (!%p588_p2), 261120   ;;  %v5112_v51 = vmov (!%p588_p2), 0.0  }
   0xc   : > { %591 = sbr.rel (%p588_p2) target bundleno = 5247 (0x147f), region = 104  ;;  %4942 = vmatprep.subr.bf16.mxu0 (!%p588_p2), %v5111_v3  ;;  %s6082_s29 = sld [smem:[#allocation2_spill]] (!%p588_p2)  ;;  %4550 = vmatprep.subr.bf16.mxu1 (!%p588_p2), %v5112_v51  ;;  %vm5113_vm2 = vmmov (!%p588_p2), 0   ;;  %v4156_v58 = vld [vmem:[%s6058_s9] ss:$0 sm:$0xff] (!%p588_p2)  ;;  %vm1541_vm3 = vcmask (!%p588_p2), 64512  }
   0xd   : > { %s6083_s1 = sld [smem:[#allocation3_spill]] (!%p588_p2)  ;;  %4554 = vmatprep.mubr.msk.bf16.mxu1 (!%p588_p2), %vm5113_vm2, %v5112_v51  ;;  %v4157_v60 = vld [vmem:[%s6059_s10] ss:$0 sm:$0xff] (!%p588_p2)  ;;  %s6086_s22 = sld [smem:[#allocation7_spill]] (!%p588_p2)  ;;  %vm1781_vm4 = vcmask (!%p588_p2), 1043456  }
  0x11   : > { %v659_v0 = vld [vmem:[%s6081_s3] sm:$0xff] (!%p588_p2)  ;;  %v660_v1 = vld [vmem:[%s6081_s3 + $0x8] sm:$0xff] (!%p588_p2)  ;;  %v661_v2 = vld [vmem:[%s6081_s3 + $0x10] sm:$0xff] (!%p588_p2) }
  0x12   : > { %v4943_v4 = vpack.c.bf16 (!%p588_p2), %v660_v1, %v659_v0  ;;  %v662_v5 = vld [vmem:[%s6081_s3 + $0x18] sm:$0xff] (!%p588_p2)  ;;  %v663_v7 = vld [vmem:[%s6081_s3 + $0x20] sm:$0xff] (!%p588_p2)  ;;  %v664_v8 = vld [vmem:[%s6081_s3 + $0x28] sm:$0xff] (!%p588_p2) }
  0x13   : > { %s6088_s25 = smov (!%p646_p3, %s4147_s25), 1  ;;  %v4946_v6 = vpack.c.bf16 %v662_v5, %v661_v2  ;;  %v4949_v9 = vpack.c.bf16 %v664_v8, %v663_v7  ;;  %v665_v10 = vld [vmem:[%s6081_s3 + $0x30] sm:$0xff]  ;;  %v666_v11 = vld [vmem:[%s6081_s3 + $0x38] sm:$0xff]  ;;  %v667_v13 = vld [vmem:[%s6081_s3 + $0x40] sm:$0xff] }
  0x14   : > { %4944 = vmatpush1.bf16.msra.mxu0 %v4943_v4  ;;  %s4405_s26 = sshll.u32 %s6088_s25, 4  ;;  %v668_v14 = vld [vmem:[%s6081_s3 + $0x48] sm:$0xff]  ;;  %v4952_v15 = vpack.c.bf16 %v666_v11, %v665_v10  ;;  %v669_v16 = vld [vmem:[%s6081_s3 + $0x50] sm:$0xff]  ;;  %v670_v17 = vld [vmem:[%s6081_s3 + $0x58] sm:$0xff] }
  0x15   : > { %4945 = vmatprep.subr.bf16.mxu0 %v5111_v3  ;;  %s5256_s0 = scalar_lea.vmem %s6082_s29, %s4405_s26  ;;  %v4955_v18 = vpack.c.bf16 %v668_v14, %v667_v13  ;;  %v671_v19 = vld [vmem:[%s6081_s3 + $0x60] sm:$0xff]  ;;  %v672_v20 = vld [vmem:[%s6081_s3 + $0x68] sm:$0xff]  ;;  %v4958_v21 = vpack.c.bf16 %v670_v17, %v669_v16  ;;  %v673_v22 = vld [vmem:[%s6081_s3 + $0x70] sm:$0xff]  ;;  %s6084_s26 = sld [smem:[#allocation5_spill]] }
  0x16   : > { %v658_v12 = vld [vmem:[%s5256_s0 + $0x8] sm:$0xff]  ;;  %v674_v23 = vld [vmem:[%s6081_s3 + $0x78] sm:$0xff]  ;;  %v4961_v24 = vpack.c.bf16 %v672_v20, %v671_v19  ;;  %v675_v25 = vld [vmem:[%s6081_s3 + $0x80] sm:$0xff]  ;;  %s4154_s29 = sshll.u32 %s6088_s25, 3 }
  0x17   : > { %4155 = vmatprep.mubr.msk.f32.mxu0 %vm683_vm0, %v658_v12  ;;  %v676_v26 = vld [vmem:[%s6081_s3 + $0x88] sm:$0xff]  ;;  %v4964_v27 = vpack.c.bf16 %v674_v23, %v673_v22  ;;  %v677_v28 = vld [vmem:[%s6081_s3 + $0x90] sm:$0xff]  ;;  %v678_v29 = vld [vmem:[%s6081_s3 + $0x98] sm:$0xff] }
  0x18   : > { %4947 = vmatpush1.bf16.msra.mxu0 %v4946_v6  ;;  %v4967_v30 = vpack.c.bf16 %v676_v26, %v675_v25  ;;  %v679_v31 = vld [vmem:[%s6081_s3 + $0xa0] sm:$0xff]  ;;  %v680_v32 = vld [vmem:[%s6081_s3 + $0xa8] sm:$0xff]  ;;  %v4970_v33 = vpack.c.bf16 %v678_v29, %v677_v28  ;;  %v681_v34 = vld [vmem:[%s6081_s3 + $0xb0] sm:$0xff] }
  0x19   : > { %4948 = vmatprep.subr.bf16.mxu0 %v5111_v3  ;;  %v682_v35 = vld [vmem:[%s6081_s3 + $0xb8] sm:$0xff]  ;;  %v4973_v36 = vpack.c.bf16 %v680_v32, %v679_v31  ;;  %v657_v38 = vld [vmem:[%s5256_s0] sm:$0xff]  ;;  %s654_s0 = scalar_lea.vmem %s6070_s21, %s4154_s29 }
  0x1a   : > { %v4976_v37 = vpack.c.bf16 %v682_v35, %v681_v34  ;;  %v656_v39 = vld [vmem:[%s6083_s1] sm:$0xff]  ;;  %s6085_s1 = sld [smem:[#allocation6_spill]] }
  0x1b   : > { %v4989_v49 = vld [vmem:[%s6084_s26] sm:$0xff]   ;;  %v4991_v52 = vld [vmem:[%s6084_s26 + $0x8] sm:$0xff]   ;;  %v4993_v63 = vld [vmem:[%s6084_s26 + $0x10] sm:$0xff]  }
  0x1c   : > { %4950 = vmatpush1.bf16.msra.mxu0 %v4949_v9  ;;  %v4990_v50 = vld [vmem:[%s6084_s26 + $0xa0] sm:$0xff]   ;;  %4551 = vmatpush3.bf16.msra.mxu1 %v4989_v49  ;;  %v4992_v53 = vld [vmem:[%s6084_s26 + $0xa8] sm:$0xff]   ;;  %v4994_v1 = vld [vmem:[%s6084_s26 + $0x18] sm:$0xff]  }
  0x1d   : > { %4951 = vmatprep.subr.bf16.mxu0 %v5111_v3  ;;  %4552 = vmatprep.subr.bf16.mxu1 %v5112_v51  ;;  %v4995_v2 = vld [vmem:[%s6084_s26 + $0x20] sm:$0xff]   ;;  %v4997_v4 = vld [vmem:[%s6084_s26 + $0x30] sm:$0xff]   ;;  %v4998_v5 = vld [vmem:[%s6084_s26 + $0x38] sm:$0xff]  }
  0x1e   : > { %v4999_v6 = vld [vmem:[%s6084_s26 + $0x40] sm:$0xff]   ;;  %v5000_v7 = vld [vmem:[%s6084_s26 + $0x48] sm:$0xff]   ;;  %v5001_v8 = vld [vmem:[%s6084_s26 + $0x50] sm:$0xff]  }
  0x1f   : > { %v5002_v9 = vld [vmem:[%s6084_s26 + $0x58] sm:$0xff]   ;;  %v5003_v10 = vld [vmem:[%s6084_s26 + $0x60] sm:$0xff]   ;;  %v5004_v11 = vld [vmem:[%s6084_s26 + $0x68] sm:$0xff]  }
  0x20   : > { %4953 = vmatpush1.bf16.msra.mxu0 %v4952_v15  ;;  %4553 = vmatpush3.bf16.msra.mxu1 %v4991_v52  ;;  %v5005_v12 = vld [vmem:[%s6084_s26 + $0x70] sm:$0xff]   ;;  %v5006_v13 = vld [vmem:[%s6084_s26 + $0x78] sm:$0xff]   ;;  %v5007_v14 = vld [vmem:[%s6084_s26 + $0x80] sm:$0xff]  }
  0x21   : > { %4954 = vmatprep.subr.bf16.mxu0 %v5111_v3  ;;  %4558 = vmatprep.subr.bf16.mxu1 %v5112_v51  ;;  %v5008_v15 = vld [vmem:[%s6084_s26 + $0x88] sm:$0xff]   ;;  %v5009_v16 = vld [vmem:[%s6084_s26 + $0x90] sm:$0xff]   ;;  %v5010_v17 = vld [vmem:[%s6084_s26 + $0x98] sm:$0xff]  }
  0x22   : > { %v5012_v19 = vld [vmem:[%s6084_s26 + $0xb8] sm:$0xff]  }
  0x24   : > { %4956 = vmatpush1.bf16.msra.mxu0 %v4955_v18  ;;  %v5011_v18 = vld [vmem:[%s6084_s26 + $0xb0] sm:$0xff]  }
  0x25   : > { %4957 = vmatprep.subr.bf16.mxu0 %v5111_v3 }
  0x28   : > { %4959 = vmatpush1.bf16.msra.mxu0 %v4958_v21 }
  0x29   : > { %4960 = vmatprep.subr.bf16.mxu0 %v5111_v3 }
  0x2c   : > { %4962 = vmatpush1.bf16.msra.mxu0 %v4961_v24 }
  0x2d   : > { %4963 = vmatprep.subr.bf16.mxu0 %v5111_v3 }
  0x30   : > { %4965 = vmatpush1.bf16.msra.mxu0 %v4964_v27 }
  0x31   : > { %4966 = vmatprep.subr.bf16.mxu0 %v5111_v3 }
  0x34   : > { %4968 = vmatpush1.bf16.msra.mxu0 %v4967_v30 }
  0x35   : > { %4969 = vmatprep.subr.bf16.mxu0 %v5111_v3 }
  0x38   : > { %4971 = vmatpush1.bf16.msra.mxu0 %v4970_v33 }
  0x39   : > { %4972 = vmatprep.subr.bf16.mxu0 %v5111_v3 }
  0x3c   : > { %4974 = vmatpush1.bf16.msra.mxu0 %v4973_v36 }
  0x3d   : > { %4975 = vmatprep.subr.bf16.mxu0 %v5111_v3  ;;  %v4996_v3 = vld [vmem:[%s6084_s26 + $0x28] sm:$0xff]  }
  0x40   : > { %4977 = vmatpush1.bf16.msra.mxu0 %v4976_v37 }
  0x41   : > { %4630 = vmatprep.subr.bf16.mxu0 %v5112_v51 }
  0x43   : > { %752 = vmatmul.mubr.f32.vlgmr.msra.gmra.mrb[0].mxu0 %v657_v38 }
  0x44   : > { %4631 = vmatpush3.bf16.msra.mxu0 %v4990_v50  ;;  %4634 = vmatprep.mubr.msk.bf16.mxu0 %vm5113_vm2, %v5112_v51 }
  0x45   : > { %4632 = vmatprep.subr.bf16.mxu0 %v5112_v51 }
  0x48   : > { %4633 = vmatpush3.bf16.msra.mxu0 %v4992_v53 }
  0x49   : > { %4646 = vmatprep.subr.bf16.mxu0 %v5112_v51 }
 0x116   : > { %v753_v40 = vpop.f32.mrb[0].mxu0 }
 0x117   : > { %v5317_v41 = vadd.f32 %v753_v40, %v656_v39  ;;  %v755_v42 = vpop.f32.mrb[1].mxu0 }
 0x119   : > { %v761_v43 = vsel %vm760_vm1, %v5317_v41, 0.0 }
 0x11a   : > { %762 = vadd.xlane.f32.xlu0 %v761_v43 }
 0x1a7   : > { %v763_v44 = vpop.xlane.xlu0 %762 }
 0x1a8   : > { %v765_v45 = vmul.f32 0.03125, %v763_v44  ;;  %v4194_v44 = vld [vmem:[%s6085_s1] ss:$0 sm:$0xff] }
 0x1aa   : > { %v766_v46 = vsub.f32 %v5317_v41, %v765_v45 }
 0x1ac   : > { %v767_v47 = vmul.f32 %v766_v46, %v766_v46 }
 0x1ae   : > { %v768_v48 = vsel %vm760_vm1, %v767_v47, 0.0 }
 0x1af   : > { %769 = vadd.xlane.f32.xlu0 %v768_v48 }
 0x23c   : > { %v770_v54 = vpop.xlane.xlu0 %769 }
 0x23d   : > { %v771_v55 = vmul.f32 0.03125, %v770_v54  ;;  %v4195_v54 = vld [vmem:[%s6085_s1 + $0x1] ss:$0 sm:$0xff] }
 0x23f   : > { %v772_v56 = vadd.f32 1e-06, %v771_v55 }
 0x241   : > { %5057 = vrsqrt.f32 %v772_v56 }
 0x24b   : > { %v5058_v57 = vpop.eup %5057 }
 0x24c   : > { %v774_v59 = vmul.f32 %v5058_v57, %v766_v46 }
 0x24e   : > { %v781_v61 = vmul.f32 %v4156_v58, %v774_v59 }
 0x250   : > { %v788_v62 = vadd.f32 %v4157_v60, %v781_v61 }
 0x252   : > { %v5354_v0 = vpack.c.bf16 %v788_v62, %v788_v62 }
 0x254   : > { %4555 = vmatmul.mubr.msk.bf16.vlgmr.msra.gmra.mrb[0].mxu1 %vm760_vm1, %v5354_v0  ;;  %4635 = vmatmul.mubr.msk.bf16.vlgmr.msra.gmra.mrb[4].mxu0 %vm760_vm1, %v5354_v0 }
 0x255   : > { %4559 = vmatpush3.bf16.msra.mxu1 %v4993_v63  ;;  %4562 = vmatprep.mubr.msk.bf16.mxu1 %vm5113_vm2, %v5112_v51  ;;  %v4196_v63 = vld [vmem:[%s6085_s1 + $0x2] ss:$0 sm:$0xff] }
 0x256   : > { %4560 = vmatprep.subr.bf16.mxu1 %v5112_v51  ;;  %4648 = vmatprep.mubr.msk.bf16.mxu0 %vm5113_vm2, %v5112_v51 }
 0x259   : > { %4561 = vmatpush3.bf16.msra.mxu1 %v4994_v1 }
 0x25a   : > { %4566 = vmatprep.subr.bf16.mxu1 %v5112_v51 }
 0x25c   : > { %4563 = vmatmul.mubr.msk.bf16.vlgmr.msra.gmra.mrb[4].mxu1 %vm760_vm1, %v5354_v0 }
 0x25d   : > { %4567 = vmatpush3.bf16.msra.mxu1 %v4995_v2  ;;  %4570 = vmatprep.mubr.msk.bf16.mxu1 %vm5113_vm2, %v5112_v51 }
 0x25e   : > { %4568 = vmatprep.subr.bf16.mxu1 %v5112_v51 }
 0x261   : > { %4569 = vmatpush3.bf16.msra.mxu1 %v4996_v3 }
 0x262   : > { %4574 = vmatprep.subr.bf16.mxu1 %v5112_v51 }
 0x264   : > { %4571 = vmatmul.mubr.msk.bf16.vlgmr.msra.gmra.mrb[8].mxu1 %vm760_vm1, %v5354_v0 }
 0x265   : > { %4575 = vmatpush3.bf16.msra.mxu1 %v4997_v4  ;;  %4578 = vmatprep.mubr.msk.bf16.mxu1 %vm5113_vm2, %v5112_v51 }
 0x266   : > { %4576 = vmatprep.subr.bf16.mxu1 %v5112_v51 }
 0x269   : > { %4577 = vmatpush3.bf16.msra.mxu1 %v4998_v5 }
 0x26a   : > { %4582 = vmatprep.subr.bf16.mxu1 %v5112_v51 }
 0x26c   : > { %4579 = vmatmul.mubr.msk.bf16.vlgmr.msra.gmra.mrb[12].mxu1 %vm760_vm1, %v5354_v0 }
 0x26d   : > { %4583 = vmatpush3.bf16.msra.mxu1 %v4999_v6  ;;  %4586 = vmatprep.mubr.msk.bf16.mxu1 %vm5113_vm2, %v5112_v51 }
 0x26e   : > { %4584 = vmatprep.subr.bf16.mxu1 %v5112_v51 }
 0x271   : > { %4585 = vmatpush3.bf16.msra.mxu1 %v5000_v7 }
 0x272   : > { %4590 = vmatprep.subr.bf16.mxu1 %v5112_v51 }
 0x274   : > { %4587 = vmatmul.mubr.msk.bf16.vlgmr.msra.gmra.mrb[16].mxu1 %vm760_vm1, %v5354_v0 }
 0x275   : > { %4591 = vmatpush3.bf16.msra.mxu1 %v5001_v8  ;;  %4594 = vmatprep.mubr.msk.bf16.mxu1 %vm5113_vm2, %v5112_v51  ;;  %v4197_v8 = vld [vmem:[%s6085_s1 + $0x3] ss:$0 sm:$0xff] }
 0x276   : > { %4592 = vmatprep.subr.bf16.mxu1 %v5112_v51 }
 0x279   : > { %4593 = vmatpush3.bf16.msra.mxu1 %v5002_v9 }
 0x27a   : > { %4598 = vmatprep.subr.bf16.mxu1 %v5112_v51 }
 0x27c   : > { %4595 = vmatmul.mubr.msk.bf16.vlgmr.msra.gmra.mrb[20].mxu1 %vm760_vm1, %v5354_v0 }
 0x27d   : > { %4599 = vmatpush3.bf16.msra.mxu1 %v5003_v10  ;;  %4602 = vmatprep.mubr.msk.bf16.mxu1 %vm5113_vm2, %v5112_v51 }
 0x27e   : > { %4600 = vmatprep.subr.bf16.mxu1 %v5112_v51 }
 0x281   : > { %4601 = vmatpush3.bf16.msra.mxu1 %v5004_v11 }
 0x282   : > { %4606 = vmatprep.subr.bf16.mxu1 %v5112_v51 }
 0x284   : > { %4603 = vmatmul.mubr.msk.bf16.vlgmr.msra.gmra.mrb[24].mxu1 %vm760_vm1, %v5354_v0 }
 0x285   : > { %4607 = vmatpush3.bf16.msra.mxu1 %v5005_v12  ;;  %4610 = vmatprep.mubr.msk.bf16.mxu1 %vm5113_vm2, %v5112_v51 }
 0x286   : > { %4608 = vmatprep.subr.bf16.mxu1 %v5112_v51 }
 0x289   : > { %4609 = vmatpush3.bf16.msra.mxu1 %v5006_v13  ;;  %v4198_v13 = vld [vmem:[%s6086_s22] ss:$0 sm:$0xff] }
 0x28a   : > { %4614 = vmatprep.subr.bf16.mxu1 %v5112_v51 }
 0x28c   : > { %4611 = vmatmul.mubr.msk.bf16.vlgmr.msra.gmra.mrb[28].mxu1 %vm760_vm1, %v5354_v0 }
 0x28d   : > { %4615 = vmatpush3.bf16.msra.mxu1 %v5007_v14  ;;  %4618 = vmatprep.mubr.msk.bf16.mxu1 %vm5113_vm2, %v5112_v51 }
 0x28e   : > { %4616 = vmatprep.subr.bf16.mxu1 %v5112_v51 }
 0x291   : > { %4617 = vmatpush3.bf16.msra.mxu1 %v5008_v15 }
 0x292   : > { %4622 = vmatprep.subr.bf16.mxu1 %v5112_v51 }
 0x294   : > { %4619 = vmatmul.mubr.msk.bf16.vlgmr.msra.gmra.mrb[32].mxu1 %vm760_vm1, %v5354_v0 }
 0x295   : > { %4623 = vmatpush3.bf16.msra.mxu1 %v5009_v16  ;;  %4626 = vmatprep.mubr.msk.bf16.mxu1 %vm5113_vm2, %v5112_v51 }
 0x296   : > { %4624 = vmatprep.subr.bf16.mxu1 %v5112_v51 }
 0x299   : > { %4625 = vmatpush3.bf16.msra.mxu1 %v5010_v17 }
 0x29a   : > { %4638 = vmatprep.subr.bf16.mxu1 %v5112_v51 }
 0x29c   : > { %4627 = vmatmul.mubr.msk.bf16.vlgmr.msra.gmra.mrb[36].mxu1 %vm760_vm1, %v5354_v0 }
 0x29d   : > { %4639 = vmatpush3.bf16.msra.mxu1 %v5011_v18  ;;  %4642 = vmatprep.mubr.msk.bf16.mxu1 %vm5113_vm2, %v5112_v51 }
 0x29e   : > { %4640 = vmatprep.subr.bf16.mxu1 %v5112_v51 }
 0x2a1   : > { %4641 = vmatpush3.bf16.msra.mxu1 %v5012_v19 }
 0x2a2   : > { %4652 = vmatprep.subr.bf16.mxu1 %v5112_v51 }
 0x2a4   : > { %4643 = vmatmul.mubr.msk.bf16.vlgmr.msra.gmra.mrb[40].mxu1 %vm760_vm1, %v5354_v0 }
 0x2a5   : > { %4654 = vmatprep.mubr.msk.bf16.mxu1 %vm5113_vm2, %v5112_v51 }
 0x327   : > { %v887_v20 = vpop.f32.mrb[0].mxu1  ;;  %v5481_v21 = vpop.f32.mrb[4].mxu0 }
 0x328   : > { %v4556_v22 = vpop.f32.mrb[1].mxu1  ;;  %v4636_v23 = vpop.f32.mrb[5].mxu0  ;;  %v1493_v48 = vadd.f32 %v4194_v44, %v887_v20 }
 0x329   : > { %v890_v24 = vpop.f32.mrb[2].mxu1  ;;  %v1410_v25 = vpop.f32.mrb[6].mxu0  ;;  %v4199_v23 = vld [vmem:[%s6086_s22 + $0x1] ss:$0 sm:$0xff] }
 0x32a   : > { %v4557_v26 = vpop.f32.mrb[3].mxu1  ;;  %v4637_v27 = vpop.f32.mrb[7].mxu0  ;;  %v1529_v50 = vpack.c.bf16 %v1493_v48, %v1493_v48 }
 0x32f   : > { %v939_v28 = vpop.f32.mrb[4].mxu1 }
 0x330   : > { %v4564_v29 = vpop.f32.mrb[5].mxu1  ;;  %v1494_v58 = vadd.f32 %v4195_v54, %v939_v28 }
 0x331   : > { %v942_v30 = vpop.f32.mrb[6].mxu1 }
 0x332   : > { %v4565_v31 = vpop.f32.mrb[7].mxu1  ;;  %v1530_v60 = vpack.c.bf16 %v1494_v58, %v1494_v58  ;;  %v1540_v58 = vld [vmem:[%s6055_s6 + $0x18] sm:$0xff] }
 0x337   : > { %v991_v32 = vpop.f32.mrb[8].mxu1 }
 0x338   : > { %v4572_v33 = vpop.f32.mrb[9].mxu1  ;;  %v1495_v3 = vadd.f32 %v4196_v63, %v991_v32 }
 0x339   : > { %v994_v34 = vpop.f32.mrb[10].mxu1 }
 0x33a   : > { %v4573_v35 = vpop.f32.mrb[11].mxu1  ;;  %v1531_v5 = vpack.c.bf16 %v1495_v3, %v1495_v3 }
 0x33b   : > { %v1537_v35 = vld [vmem:[%s6055_s6] sm:$0xff] }
 0x33f   : > { %v1043_v36 = vpop.f32.mrb[12].mxu1 }
 0x340   : > { %v4580_v37 = vpop.f32.mrb[13].mxu1  ;;  %v1496_v12 = vadd.f32 %v4197_v8, %v1043_v36 }
 0x341   : > { %v1046_v38 = vpop.f32.mrb[14].mxu1 }
 0x342   : > { %v4581_v39 = vpop.f32.mrb[15].mxu1  ;;  %v1532_v15 = vpack.c.bf16 %v1496_v12, %v1496_v12 }
 0x347   : > { %v1095_v40 = vpop.f32.mrb[16].mxu1 }
 0x348   : > { %v1533_v42 = vpack.c.bf16 %v1095_v40, %v1095_v40  ;;  %v4588_v43 = vpop.f32.mrb[17].mxu1 }
 0x349   : > { %v1098_v45 = vpop.f32.mrb[18].mxu1  ;;  %v1538_v43 = vld [vmem:[%s6055_s6 + $0x8] sm:$0xff] }
 0x34a   : > { %v1546_v46 = vsel %vm1541_vm3, %v1533_v42, 0  ;;  %v4589_v47 = vpop.f32.mrb[19].mxu1 }
 0x34b   : > { %4647 = vmatpush3.bf16.xpose.msra.mxu0 %v1546_v46 }
 0x34c   : > { %4658 = vmatprep.subr.bf16.mxu0 %v5112_v51 }
 0x34f   : > { %v1147_v49 = vpop.f32.mrb[20].mxu1 }
 0x350   : > { %v1534_v52 = vpack.c.bf16 %v1147_v49, %v1147_v49  ;;  %v4596_v53 = vpop.f32.mrb[21].mxu1 }
 0x351   : > { %v1150_v55 = vpop.f32.mrb[22].mxu1 }
 0x352   : > { %v1592_v56 = vsel %vm1541_vm3, %v1534_v52, 0  ;;  %v4597_v57 = vpop.f32.mrb[23].mxu1  ;;  %4649 = vmatmul.mubr.msk.bf16.vlgmr.msra.gmra.mrb[8].mxu0 %vm1541_vm3, %v1529_v50  ;;  %v1539_v50 = vld [vmem:[%s6055_s6 + $0x10] sm:$0xff] }
 0x353   : > { %4653 = vmatpush3.bf16.xpose.msra.mxu1 %v1592_v56  ;;  %4660 = vmatprep.mubr.msk.bf16.mxu0 %vm5113_vm2, %v5112_v51 }
 0x354   : > { %4664 = vmatprep.subr.bf16.mxu1 %v5112_v51 }
 0x357   : > { %v1199_v59 = vpop.f32.mrb[24].mxu1 }
 0x358   : > { %v1535_v61 = vpack.c.bf16 %v1199_v59, %v1199_v59  ;;  %v4604_v62 = vpop.f32.mrb[25].mxu1 }
 0x359   : > { %v1202_v0 = vpop.f32.mrb[26].mxu1 }
 0x35a   : > { %v1638_v1 = vsel %vm1541_vm3, %v1535_v61, 0  ;;  %v4605_v2 = vpop.f32.mrb[27].mxu1  ;;  %4655 = vmatmul.mubr.msk.bf16.vlgmr.msra.gmra.mrb[44].mxu1 %vm1541_vm3, %v1530_v60 }
 0x35b   : > { %4659 = vmatpush3.bf16.xpose.msra.mxu0 %v1638_v1  ;;  %4666 = vmatprep.mubr.msk.bf16.mxu1 %vm5113_vm2, %v5112_v51 }
 0x35c   : > { %4670 = vmatprep.subr.bf16.mxu0 %v5112_v51 }
 0x35f   : > { %v1251_v4 = vpop.f32.mrb[28].mxu1 }
 0x360   : > { %v1536_v6 = vpack.c.bf16 %v1251_v4, %v1251_v4  ;;  %v4612_v7 = vpop.f32.mrb[29].mxu1 }
 0x361   : > { %v1254_v9 = vpop.f32.mrb[30].mxu1 }
 0x362   : > { %v1684_v10 = vsel %vm1541_vm3, %v1536_v6, 0  ;;  %v4613_v11 = vpop.f32.mrb[31].mxu1  ;;  %4661 = vmatmul.mubr.msk.bf16.vlgmr.msra.gmra.mrb[12].mxu0 %vm1541_vm3, %v1531_v5 }
 0x363   : > { %4665 = vmatpush3.bf16.xpose.msra.mxu1 %v1684_v10  ;;  %4672 = vmatprep.mubr.msk.bf16.mxu0 %vm5113_vm2, %v5112_v51 }
 0x364   : > { %4676 = vmatprep.subr.bf16.mxu1 %v5112_v51 }
 0x367   : > { %v1303_v14 = vpop.f32.mrb[32].mxu1 }
 0x368   : > { %v1525_v16 = vadd.f32 %v4198_v13, %v1303_v14  ;;  %v4620_v17 = vpop.f32.mrb[33].mxu1 }
 0x369   : > { %v1306_v18 = vpop.f32.mrb[34].mxu1 }
 0x36a   : > { %v1774_v19 = vpack.c.bf16 %v1525_v16, %v1525_v16  ;;  %v4621_v20 = vpop.f32.mrb[35].mxu1  ;;  %4667 = vmatmul.mubr.msk.bf16.vlgmr.msra.gmra.mrb[48].mxu1 %vm1541_vm3, %v1532_v15 }
 0x36b   : > { %4678 = vmatprep.mubr.msk.bf16.mxu1 %vm5113_vm2, %v5112_v51 }
 0x36c   : > { %v1783_v22 = vsel %vm1781_vm4, %v1774_v19, 0 }
 0x36d   : > { %4671 = vmatpush3.bf16.msra.mxu0 %v1783_v22 }
 0x36e   : > { %4682 = vmatprep.subr.bf16.mxu0 %v5112_v51 }
 0x36f   : > { %v1355_v24 = vpop.f32.mrb[36].mxu1 }
 0x370   : > { %v1526_v25 = vadd.f32 %v4199_v23, %v1355_v24  ;;  %v4628_v26 = vpop.f32.mrb[37].mxu1  ;;  %v4200_v23 = vld [vmem:[%s6086_s22 + $0x2] ss:$0 sm:$0xff] }
 0x371   : > { %v1358_v27 = vpop.f32.mrb[38].mxu1  ;;  %v1527_v24 = vadd.f32 %v4200_v23, %v5481_v21 }
 0x372   : > { %v1775_v28 = vpack.c.bf16 %v1526_v25, %v1526_v25  ;;  %v4629_v29 = vpop.f32.mrb[39].mxu1 }
 0x373   : > { %v1776_v27 = vpack.c.bf16 %v1527_v24, %v1527_v24  ;;  %v4201_v29 = vld [vmem:[%s6086_s22 + $0x3] ss:$0 sm:$0xff] }
 0x374   : > { %v1829_v30 = vsel %vm1781_vm4, %v1775_v28, 0 }
 0x375   : > { %4677 = vmatpush3.bf16.msra.mxu1 %v1829_v30 }
 0x376   : > { %4688 = vmatprep.subr.bf16.mxu1 %v5112_v51 }
 0x377   : > { %v5525_v31 = vpop.f32.mrb[40].mxu1 }
 0x378   : > { %v4644_v32 = vpop.f32.mrb[41].mxu1 }
 0x379   : > { %v1462_v33 = vpop.f32.mrb[42].mxu1  ;;  %v1875_v32 = vsel %vm1781_vm4, %v1776_v27, 0 }
 0x37a   : > { %v4645_v34 = vpop.f32.mrb[43].mxu1  ;;  %v1528_v33 = vadd.f32 %v4201_v29, %v5525_v31 }
 0x425   : > { %v1582_v36 = vpop.f32.mrb[8].mxu0 }
 0x426   : > { %v1583_v37 = vadd.f32 %v1582_v36, %v1537_v35  ;;  %v4650_v38 = vpop.f32.mrb[9].mxu0  ;;  %v1777_v35 = vpack.c.bf16 %v1528_v33, %v1528_v33 }
 0x427   : > { %v1585_v39 = vpop.f32.mrb[10].mxu0 }
 0x428   : > { %v4651_v40 = vpop.f32.mrb[11].mxu0  ;;  %v1726_v42 = vsel %vm1541_vm3, %v1583_v37, -inf  ;;  %v1921_v38 = vsel %vm1781_vm4, %v1777_v35, 0  ;;  %v4215_v35 = vld [vmem:[%s6060_s11] ss:$0 sm:$0xff] }
 0x429   : > { %1727 = vmax.xlane.f32.xlu1 %v1726_v42 }
 0x42d   : > { %v1628_v44 = vpop.f32.mrb[44].mxu1 }
 0x42e   : > { %v1629_v45 = vadd.f32 %v1628_v44, %v1538_v43  ;;  %v4656_v46 = vpop.f32.mrb[45].mxu1 }
 0x42f   : > { %v1631_v47 = vpop.f32.mrb[46].mxu1  ;;  %v1967_v46 = vld [vmem:[%s6056_s7] sm:$0xf] }
 0x430   : > { %v4657_v48 = vpop.f32.mrb[47].mxu1  ;;  %v1729_v49 = vsel %vm1541_vm3, %v1629_v45, -inf  ;;  %v1975_v47 = vsel %vm1781_vm4, %v1967_v46, 0  ;;  %v5013_v46 = vld [vmem:[%s6063_s14] sm:$0xff]  }
 0x431   : > { %1730 = vmax.xlane.f32.xlu1 %v1729_v49  ;;  %v1968_v48 = vld [vmem:[%s6056_s7 + $0x4] sm:$0xf] }
 0x432   : > { %v2021_v49 = vsel %vm1781_vm4, %v1968_v48, 0 }
 0x435   : > { %v1674_v52 = vpop.f32.mrb[12].mxu0 }
 0x436   : > { %v1675_v53 = vadd.f32 %v1674_v52, %v1539_v50  ;;  %v4662_v54 = vpop.f32.mrb[13].mxu0  ;;  %v1969_v50 = vld [vmem:[%s6056_s7 + $0x8] sm:$0xf] }
 0x437   : > { %v1677_v55 = vpop.f32.mrb[14].mxu0 }
 0x438   : > { %v4663_v56 = vpop.f32.mrb[15].mxu0  ;;  %v1732_v57 = vsel %vm1541_vm3, %v1675_v53, -inf  ;;  %v2067_v55 = vsel %vm1781_vm4, %v1969_v50, 0 }
 0x439   : > { %1733 = vmax.xlane.f32.xlu0 %v1732_v57 }
 0x43d   : > { %v1720_v59 = vpop.f32.mrb[48].mxu1 }
 0x43e   : > { %v1721_v60 = vadd.f32 %v1720_v59, %v1540_v58  ;;  %v4668_v61 = vpop.f32.mrb[49].mxu1  ;;  %v1970_v58 = vld [vmem:[%s6056_s7 + $0xc] sm:$0xf] }
 0x43f   : > { %v1723_v62 = vpop.f32.mrb[50].mxu1 }
 0x440   : > { %v4669_v63 = vpop.f32.mrb[51].mxu1  ;;  %v1735_v0 = vsel %vm1541_vm3, %v1721_v60, -inf  ;;  %v2113_v62 = vsel %vm1781_vm4, %v1970_v58, 0  ;;  %v5015_v58 = vld [vmem:[%s6065_s16] sm:$0xff]  }
 0x441   : > { %1736 = vmax.xlane.f32.xlu1 %v1735_v0 }
 0x4b6   : > { %v1728_v1 = vpop.xlane.xlu1 %1727 }
 0x4b7   : > { %v1738_v2 = vsub.f32 %v1583_v37, %v1728_v1 }
 0x4b9   : > { %v1742_v3 = vmul.f32 1.442695, %v1738_v2 }
 0x4bb   : > { %5059 = vpow2.f32 %v1742_v3 }
 0x4be   : > { %v1731_v4 = vpop.xlane.xlu1 %1730 }
 0x4bf   : > { %v1739_v5 = vsub.f32 %v1629_v45, %v1731_v4 }
 0x4c1   : > { %v1744_v6 = vmul.f32 1.442695, %v1739_v5 }
 0x4c3   : > { %5061 = vpow2.f32 %v1744_v6 }
 0x4c5   : > { %v5060_v7 = vpop.eup %5059 }
 0x4c6   : > { %v1734_v8 = vpop.xlane.xlu0 %1733  ;;  %v1750_v9 = vsel %vm1541_vm3, %v5060_v7, 0.0 }
 0x4c7   : > { %v1740_v10 = vsub.f32 %v1675_v53, %v1734_v8  ;;  %1751 = vadd.xlane.f32.xlu0 %v1750_v9 }
 0x4c9   : > { %v1746_v11 = vmul.f32 1.442695, %v1740_v10 }
 0x4cb   : > { %5063 = vpow2.f32 %v1746_v11 }
 0x4cd   : > { %v5062_v12 = vpop.eup %5061 }
 0x4ce   : > { %v1737_v13 = vpop.xlane.xlu1 %1736  ;;  %v1753_v14 = vsel %vm1541_vm3, %v5062_v12, 0.0 }
 0x4cf   : > { %v1741_v15 = vsub.f32 %v1721_v60, %v1737_v13  ;;  %1754 = vadd.xlane.f32.xlu1 %v1753_v14 }
 0x4d1   : > { %v1748_v16 = vmul.f32 1.442695, %v1741_v15 }
 0x4d3   : > { %5065 = vpow2.f32 %v1748_v16 }
 0x4d5   : > { %v5064_v17 = vpop.eup %5063 }
 0x4d6   : > { %v1756_v18 = vsel %vm1541_vm3, %v5064_v17, 0.0 }
 0x4d7   : > { %1757 = vadd.xlane.f32.xlu0 %v1756_v18 }
 0x4dd   : > { %v5066_v19 = vpop.eup %5065 }
 0x4de   : > { %v1759_v20 = vsel %vm1541_vm3, %v5066_v19, 0.0 }
 0x4df   : > { %1760 = vadd.xlane.f32.xlu1 %v1759_v20 }
 0x554   : > { %v1752_v22 = vpop.xlane.xlu0 %1751 }
 0x555   : > { %5067 = vrcp.f32 %v1752_v22 }
 0x55c   : > { %v1755_v25 = vpop.xlane.xlu1 %1754 }
 0x55d   : > { %5069 = vrcp.f32 %v1755_v25 }
 0x55f   : > { %v5068_v26 = vpop.eup %5067 }
 0x560   : > { %v1766_v28 = vmul.f32 %v5068_v26, %v5060_v7 }
 0x562   : > { %v1770_v30 = vpack.c.bf16 %v1766_v28, %v1766_v28 }
 0x564   : > { %4673 = vmatmul.mubr.msk.bf16.vlgmr.msra.gmra.mrb[16].mxu0 %vm1541_vm3, %v1770_v30  ;;  %v1758_v34 = vpop.xlane.xlu0 %1757 }
 0x565   : > { %4683 = vmatpush3.bf16.msra.mxu0 %v1875_v32  ;;  %5071 = vrcp.f32 %v1758_v34  ;;  %4684 = vmatprep.mubr.msk.bf16.mxu0 %vm5113_vm2, %v5112_v51  ;;  %v4214_v32 = vld [vmem:[%s6057_s8] ss:$0 sm:$0xff] }
 0x566   : > { %4694 = vmatprep.subr.bf16.mxu0 %v5112_v51 }
 0x567   : > { %v5070_v21 = vpop.eup %5069 }
 0x568   : > { %v1767_v36 = vmul.f32 %v5070_v21, %v5062_v12 }
 0x56a   : > { %v1771_v37 = vpack.c.bf16 %v1767_v36, %v1767_v36 }
 0x56c   : > { %4679 = vmatmul.mubr.msk.bf16.vlgmr.msra.gmra.mrb[52].mxu1 %vm1541_vm3, %v1771_v37  ;;  %v1761_v39 = vpop.xlane.xlu1 %1760 }
 0x56d   : > { %4689 = vmatpush3.bf16.msra.mxu1 %v1921_v38  ;;  %5073 = vrcp.f32 %v1761_v39  ;;  %4690 = vmatprep.mubr.msk.bf16.mxu1 %vm5113_vm2, %v5112_v51 }
 0x56e   : > { %4700 = vmatprep.subr.bf16.mxu1 %v5112_v51 }
 0x56f   : > { %v5072_v31 = vpop.eup %5071 }
 0x570   : > { %v1768_v40 = vmul.f32 %v5072_v31, %v5064_v17 }
 0x572   : > { %v1772_v42 = vpack.c.bf16 %v1768_v40, %v1768_v40 }
 0x574   : > { %4685 = vmatmul.mubr.msk.bf16.vlgmr.msra.gmra.mrb[20].mxu0 %vm1541_vm3, %v1772_v42 }
 0x575   : > { %4696 = vmatprep.mubr.msk.bf16.mxu0 %vm5113_vm2, %v5112_v51  ;;  %4695 = vmatpush3.bf16.msra.mxu0 %v1975_v47 }
 0x576   : > { %4706 = vmatprep.subr.bf16.mxu0 %v5112_v51 }
 0x577   : > { %v5074_v43 = vpop.eup %5073 }
 0x578   : > { %v1769_v44 = vmul.f32 %v5074_v43, %v5066_v19 }
 0x57a   : > { %v1773_v45 = vpack.c.bf16 %v1769_v44, %v1769_v44 }
 0x57c   : > { %4691 = vmatmul.mubr.msk.bf16.vlgmr.msra.gmra.mrb[56].mxu1 %vm1541_vm3, %v1773_v45 }
 0x57d   : > { %4702 = vmatprep.mubr.msk.bf16.mxu1 %vm5113_vm2, %v5112_v51  ;;  %4701 = vmatpush3.bf16.msra.mxu1 %v2021_v49 }
 0x57e   : > { %4712 = vmatprep.subr.bf16.mxu1 %v5112_v51 }
 0x637   : > { %v1819_v52 = vpop.f32.mrb[16].mxu0 }
 0x638   : > { %v1963_v53 = vpack.c.bf16 %v1819_v52, %v1819_v52  ;;  %v4674_v54 = vpop.f32.mrb[17].mxu0  ;;  %v4216_v52 = vld [vmem:[%s6061_s12] ss:$0 sm:$0xff] }
 0x639   : > { %v1822_v56 = vpop.f32.mrb[18].mxu0  ;;  %v4217_v54 = vld [vmem:[%s6062_s13] ss:$0 sm:$0xff] }
 0x63a   : > { %v4675_v57 = vpop.f32.mrb[19].mxu0  ;;  %4697 = vmatmul.mubr.msk.bf16.vlgmr.msra.gmra.mrb[24].mxu0 %vm1541_vm3, %v1963_v53 }
 0x63b   : > { %4707 = vmatpush3.bf16.msra.mxu0 %v2067_v55  ;;  %4708 = vmatprep.mubr.msk.bf16.mxu0 %vm5113_vm2, %v5112_v51 }
 0x63c   : > { %4718 = vmatprep.subr.bf16.mxu0 %v5112_v51 }
 0x63f   : > { %v1865_v59 = vpop.f32.mrb[52].mxu1 }
 0x640   : > { %v1964_v60 = vpack.c.bf16 %v1865_v59, %v1865_v59  ;;  %v4680_v61 = vpop.f32.mrb[53].mxu1  ;;  %v5016_v59 = vld [vmem:[%s6065_s16 + $0x8] sm:$0xff]  }
 0x641   : > { %v1868_v63 = vpop.f32.mrb[54].mxu1  ;;  %v5018_v61 = vld [vmem:[%s6065_s16 + $0x18] sm:$0xff]  }
 0x642   : > { %v4681_v0 = vpop.f32.mrb[55].mxu1  ;;  %4703 = vmatmul.mubr.msk.bf16.vlgmr.msra.gmra.mrb[60].mxu1 %vm1541_vm3, %v1964_v60  ;;  %v5017_v60 = vld [vmem:[%s6065_s16 + $0x10] sm:$0xff]   ;;  %v5020_v63 = vld [vmem:[%s6065_s16 + $0x28] sm:$0xff]  }
 0x643   : > { %4713 = vmatpush3.bf16.msra.mxu1 %v2113_v62  ;;  %4714 = vmatprep.mubr.msk.bf16.mxu1 %vm5113_vm2, %v5112_v51  ;;  %v5019_v62 = vld [vmem:[%s6065_s16 + $0x20] sm:$0xff]   ;;  %v5021_v0 = vld [vmem:[%s6065_s16 + $0x30] sm:$0xff]  }
 0x644   : > { %4726 = vmatprep.subr.bf16.mxu1 %v5112_v51 }
 0x647   : > { %v1911_v1 = vpop.f32.mrb[20].mxu0 }
 0x648   : > { %v1965_v2 = vpack.c.bf16 %v1911_v1, %v1911_v1  ;;  %v4686_v3 = vpop.f32.mrb[21].mxu0  ;;  %v5022_v1 = vld [vmem:[%s6065_s16 + $0x38] sm:$0xff]  }
 0x649   : > { %v1914_v4 = vpop.f32.mrb[22].mxu0 }
 0x64a   : > { %v4687_v5 = vpop.f32.mrb[23].mxu0  ;;  %4709 = vmatmul.mubr.msk.bf16.vlgmr.msra.gmra.mrb[28].mxu0 %vm1541_vm3, %v1965_v2  ;;  %v4218_v2 = vld [vmem:[%s6064_s15] ss:$0 sm:$0xff] }
 0x64b   : > { %4722 = vmatprep.mubr.msk.bf16.mxu0 %vm5113_vm2, %v5112_v51  ;;  %4719 = vmatpush3.bf16.msra.mxu0 %v5013_v46 }
 0x64c   : > { %4720 = vmatprep.subr.bf16.mxu0 %v5112_v51 }
 0x64f   : > { %v1957_v6 = vpop.f32.mrb[56].mxu1 }
 0x650   : > { %v1966_v7 = vpack.c.bf16 %v1957_v6, %v1957_v6  ;;  %v4692_v8 = vpop.f32.mrb[57].mxu1 }
 0x651   : > { %v1960_v9 = vpop.f32.mrb[58].mxu1 }
 0x652   : > { %v4693_v10 = vpop.f32.mrb[59].mxu1  ;;  %4715 = vmatmul.mubr.msk.bf16.vlgmr.msra.gmra.mrb[64].mxu1 %vm1541_vm3, %v1966_v7 }
 0x653   : > { %4742 = vmatprep.mubr.msk.bf16.mxu1 %vm5113_vm2, %v5112_v51  ;;  %4727 = vmatpush3.bf16.msra.mxu1 %v5015_v58  ;;  %v5037_v58 = vld [vmem:[%s6084_s26 + $0xf8] sm:$0xff]  }
 0x654   : > { %4728 = vmatprep.subr.bf16.mxu1 %v5112_v51 }
 0x657   : > { %4729 = vmatpush3.bf16.msra.mxu1 %v5016_v59  ;;  %v5038_v59 = vld [vmem:[%s6084_s26 + $0x168] sm:$0xff]  }
 0x658   : > { %4730 = vmatprep.subr.bf16.mxu1 %v5112_v51 }
 0x65b   : > { %4731 = vmatpush3.bf16.msra.mxu1 %v5017_v60  ;;  %v5039_v60 = vld [vmem:[%s6084_s26 + $0x110] sm:$0xff]  }
 0x65c   : > { %4732 = vmatprep.subr.bf16.mxu1 %v5112_v51 }
 0x65f   : > { %4733 = vmatpush3.bf16.msra.mxu1 %v5018_v61  ;;  %v5040_v61 = vld [vmem:[%s6084_s26 + $0x118] sm:$0xff]  }
 0x660   : > { %4734 = vmatprep.subr.bf16.mxu1 %v5112_v51 }
 0x663   : > { %4735 = vmatpush3.bf16.msra.mxu1 %v5019_v62  ;;  %v5041_v62 = vld [vmem:[%s6084_s26 + $0x130] sm:$0xff]  }
 0x664   : > { %4736 = vmatprep.subr.bf16.mxu1 %v5112_v51 }
 0x667   : > { %4737 = vmatpush3.bf16.msra.mxu1 %v5020_v63  ;;  %v5042_v63 = vld [vmem:[%s6084_s26 + $0x138] sm:$0xff]  }
 0x668   : > { %4738 = vmatprep.subr.bf16.mxu1 %v5112_v51 }
 0x66b   : > { %4739 = vmatpush3.bf16.msra.mxu1 %v5021_v0  ;;  %v5043_v0 = vld [vmem:[%s6084_s26 + $0x150] sm:$0xff]  }
 0x66c   : > { %4740 = vmatprep.subr.bf16.mxu1 %v5112_v51 }
 0x66f   : > { %4741 = vmatpush3.bf16.msra.mxu1 %v5022_v1  ;;  %v5044_v1 = vld [vmem:[%s6084_s26 + $0x158] sm:$0xff]  }
 0x670   : > { %4778 = vmatprep.subr.bf16.mxu1 %v5112_v51 }
 0x70d   : > { %v2011_v11 = vpop.f32.mrb[24].mxu0 }
 0x70e   : > { %v4698_v12 = vpop.f32.mrb[25].mxu0  ;;  %v2155_v16 = vsel %vm760_vm1, %v2011_v11, 0.0 }
 0x70f   : > { %v2014_v13 = vpop.f32.mrb[26].mxu0 }
 0x710   : > { %v4699_v14 = vpop.f32.mrb[27].mxu0 }
 0x715   : > { %v2057_v15 = vpop.f32.mrb[60].mxu1 }
 0x716   : > { %v2156_v17 = vsel %vm760_vm1, %v2057_v15, 0.0  ;;  %v4704_v18 = vpop.f32.mrb[61].mxu1 }
 0x717   : > { %v2157_v19 = vadd.f32 %v2156_v17, %v2155_v16  ;;  %v2060_v20 = vpop.f32.mrb[62].mxu1  ;;  %v4222_v18 = vld [vmem:[%s6066_s17] ss:$0 sm:$0xff] }
 0x718   : > { %v4705_v22 = vpop.f32.mrb[63].mxu1  ;;  %v4231_v20 = vld [vmem:[%s6067_s18] ss:$0 sm:$0xff] }
 0x71d   : > { %v2103_v23 = vpop.f32.mrb[28].mxu0 }
 0x71e   : > { %v2158_v24 = vsel %vm760_vm1, %v2103_v23, 0.0  ;;  %v4710_v25 = vpop.f32.mrb[29].mxu0 }
 0x71f   : > { %v2159_v26 = vadd.f32 %v2158_v24, %v2157_v19  ;;  %v2106_v27 = vpop.f32.mrb[30].mxu0 }
 0x720   : > { %v4711_v28 = vpop.f32.mrb[31].mxu0 }
 0x725   : > { %v2149_v29 = vpop.f32.mrb[64].mxu1 }
 0x726   : > { %v2160_v30 = vsel %vm760_vm1, %v2149_v29, 0.0  ;;  %v4716_v33 = vpop.f32.mrb[65].mxu1 }
 0x727   : > { %v2161_v34 = vadd.f32 %v2160_v30, %v2159_v26  ;;  %v2152_v21 = vpop.f32.mrb[66].mxu1 }
 0x728   : > { %v4717_v36 = vpop.f32.mrb[67].mxu1  ;;  %v5023_v21 = vld [vmem:[%s6084_s26 + $0xc0] sm:$0xff]  }
 0x729   : > { %v2170_v37 = vadd.f32 %v4214_v32, %v2161_v34  ;;  %v5025_v36 = vld [vmem:[%s6084_s26 + $0xc8] sm:$0xff]  }
 0x72b   : > { %v2177_v38 = vmul.f32 %v4215_v35, %v2170_v37  ;;  %v5024_v35 = vld [vmem:[%s6084_s26 + $0x100] sm:$0xff]   ;;  %v5026_v37 = vld [vmem:[%s6084_s26 + $0x108] sm:$0xff]  }
 0x72d   : > { %v5614_v39 = vadd.f32 %v2177_v38, %v5317_v41  ;;  %v5014_v41 = vld [vmem:[%s6063_s14 + $0x8] sm:$0xff]  }
 0x72e   : > { %4721 = vmatpush3.bf16.msra.mxu0 %v5014_v41  ;;  %v5027_v41 = vld [vmem:[%s6084_s26 + $0xd0] sm:$0xff]  }
 0x72f   : > { %v2181_v31 = vsel %vm760_vm1, %v5614_v39, 0.0  ;;  %4746 = vmatprep.subr.bf16.mxu0 %v5112_v51 }
 0x730   : > { %2182 = vadd.xlane.f32.xlu0 %v2181_v31 }
 0x7bd   : > { %v2183_v40 = vpop.xlane.xlu0 %2182 }
 0x7be   : > { %v2184_v42 = vmul.f32 0.03125, %v2183_v40 }
 0x7c0   : > { %v2185_v43 = vsub.f32 %v5614_v39, %v2184_v42  ;;  %v4234_v42 = vld [vmem:[%s6058_s9 + $0x1] ss:$0 sm:$0xff] }
 0x7c2   : > { %v2186_v44 = vmul.f32 %v2185_v43, %v2185_v43 }
 0x7c4   : > { %v2187_v45 = vsel %vm760_vm1, %v2186_v44, 0.0  ;;  %v4235_v44 = vld [vmem:[%s6059_s10 + $0x1] ss:$0 sm:$0xff] }
 0x7c5   : > { %2188 = vadd.xlane.f32.xlu1 %v2187_v45 }
 0x852   : > { %v2189_v47 = vpop.xlane.xlu1 %2188 }
 0x853   : > { %v2190_v48 = vmul.f32 0.03125, %v2189_v47  ;;  %v5028_v47 = vld [vmem:[%s6084_s26 + $0x120] sm:$0xff]  }
 0x855   : > { %v2191_v49 = vadd.f32 1e-06, %v2190_v48 }
 0x857   : > { %5075 = vrsqrt.f32 %v2191_v49  ;;  %v5029_v49 = vld [vmem:[%s6084_s26 + $0xd8] sm:$0xff]  }
 0x861   : > { %v5076_v50 = vpop.eup %5075 }
 0x862   : > { %v2193_v53 = vmul.f32 %v5076_v50, %v2185_v43  ;;  %v5030_v50 = vld [vmem:[%s6084_s26 + $0x128] sm:$0xff]  }
 0x864   : > { %v2200_v55 = vmul.f32 %v4216_v52, %v2193_v53  ;;  %v5031_v52 = vld [vmem:[%s6084_s26 + $0xe0] sm:$0xff]  }
 0x865   : > { %v5032_v53 = vld [vmem:[%s6084_s26 + $0x140] sm:$0xff]  }
 0x866   : > { %v2207_v56 = vadd.f32 %v4217_v54, %v2200_v55  ;;  %v5033_v54 = vld [vmem:[%s6084_s26 + $0xe8] sm:$0xff]  }
 0x867   : > { %v5034_v55 = vld [vmem:[%s6084_s26 + $0x148] sm:$0xff]  }
 0x868   : > { %v2208_v57 = vpack.c.bf16 %v2207_v56, %v2207_v56  ;;  %v5035_v56 = vld [vmem:[%s6084_s26 + $0xf0] sm:$0xff]  }
 0x86a   : > { %4723 = vmatmul.mubr.msk.bf16.vlgmr.msra.gmra.mrb[32].mxu0 %vm760_vm1, %v2208_v57  ;;  %v5036_v57 = vld [vmem:[%s6084_s26 + $0x160] sm:$0xff]  }
 0x86b   : > { %4750 = vmatprep.mubr.msk.bf16.mxu0 %vm5113_vm2, %v5112_v51  ;;  %4747 = vmatpush3.bf16.msra.mxu0 %v5023_v21 }
 0x86c   : > { %4748 = vmatprep.subr.bf16.mxu0 %v5112_v51 }
 0x86f   : > { %4749 = vmatpush3.bf16.msra.mxu0 %v5025_v36 }
 0x870   : > { %4754 = vmatprep.subr.bf16.mxu0 %v5112_v51 }
 0x93d   : > { %v2269_v3 = vpop.f32.mrb[32].mxu0 }
 0x93e   : > { %v2270_v4 = vadd.f32 %v4218_v2, %v2269_v3  ;;  %v4724_v5 = vpop.f32.mrb[33].mxu0  ;;  %v5045_v2 = vld [vmem:[%s6084_s26 + $0x170] sm:$0xff]   ;;  %v5046_v3 = vld [vmem:[%s6084_s26 + $0x178] sm:$0xff]  }
 0x93f   : > { %v2272_v6 = vpop.f32.mrb[34].mxu0 }
 0x940   : > { %v2275_v7 = vmul.f32 %v2270_v4, %v2270_v4  ;;  %v4725_v8 = vpop.f32.mrb[35].mxu0 }
 0x942   : > { %v2276_v9 = vmul.f32 %v2275_v7, %v2270_v4 }
 0x944   : > { %v2277_v10 = vmul.f32 0.044715, %v2276_v9  ;;  %v4324_v9 = vld [vmem:[%s6085_s1 + $0x4] ss:$0 sm:$0xff] }
 0x946   : > { %v2278_v11 = vadd.f32 %v2277_v10, %v2270_v4 }
 0x948   : > { %v2279_v12 = vmul.f32 0.7978846, %v2278_v11 }
 0x94a   : > { %5077 = vtanh.f32 %v2279_v12 }
 0x954   : > { %v5078_v13 = vpop.eup %5077 }
 0x955   : > { %v2281_v14 = vadd.f32 1.0, %v5078_v13 }
 0x957   : > { %v2282_v15 = vmul.f32 0.5, %v2281_v14 }
 0x959   : > { %v2283_v16 = vmul.f32 %v2282_v15, %v2270_v4 }
 0x95b   : > { %v2284_v17 = vpack.c.bf16 %v2283_v16, %v2283_v16 }
 0x95d   : > { %4743 = vmatmul.mubr.bf16.vlgmr.msra.gmra.mrb[68].mxu1 %v2284_v17 }
 0x95e   : > { %4782 = vmatprep.mubr.msk.bf16.mxu1 %vm5113_vm2, %v5112_v51  ;;  %4779 = vmatpush3.bf16.msra.mxu1 %v5024_v35 }
 0x95f   : > { %4780 = vmatprep.subr.bf16.mxu1 %v5112_v51 }
 0x962   : > { %4781 = vmatpush3.bf16.msra.mxu1 %v5026_v37 }
 0x963   : > { %4794 = vmatprep.subr.bf16.mxu1 %v5112_v51 }
 0xa30   : > { %v2390_v19 = vpop.f32.mrb[68].mxu1 }
 0xa31   : > { %v2391_v22 = vadd.f32 %v4222_v18, %v2390_v19  ;;  %v4744_v23 = vpop.f32.mrb[69].mxu1 }
 0xa32   : > { %v2393_v24 = vpop.f32.mrb[70].mxu1 }
 0xa33   : > { %v2403_v25 = vmul.f32 %v4231_v20, %v2391_v22  ;;  %v4745_v26 = vpop.f32.mrb[71].mxu1 }
 0xa35   : > { %v5681_v27 = vadd.f32 %v2403_v25, %v5614_v39 }
 0xa37   : > { %v2409_v28 = vsel %vm760_vm1, %v5681_v27, 0.0 }
 0xa38   : > { %2410 = vadd.xlane.f32.xlu0 %v2409_v28 }
 0xac5   : > { %v2411_v29 = vpop.xlane.xlu0 %2410 }
 0xac6   : > { %v2412_v30 = vmul.f32 0.03125, %v2411_v29  ;;  %v4326_v29 = vld [vmem:[%s6085_s1 + $0x6] ss:$0 sm:$0xff] }
 0xac8   : > { %v2413_v32 = vsub.f32 %v5681_v27, %v2412_v30  ;;  %v4332_v30 = vld [vmem:[%s6086_s22 + $0x4] ss:$0 sm:$0xff] }
 0xaca   : > { %v2414_v33 = vmul.f32 %v2413_v32, %v2413_v32 }
 0xacc   : > { %v2415_v34 = vsel %vm760_vm1, %v2414_v33, 0.0 }
 0xacd   : > { %2416 = vadd.xlane.f32.xlu1 %v2415_v34 }
 0xb5a   : > { %v2417_v38 = vpop.xlane.xlu1 %2416 }
 0xb5b   : > { %v2418_v39 = vmul.f32 0.03125, %v2417_v38 }
 0xb5d   : > { %v2419_v31 = vadd.f32 1e-06, %v2418_v39 }
 0xb5f   : > { %5079 = vrsqrt.f32 %v2419_v31 }
 0xb69   : > { %v5080_v40 = vpop.eup %5079 }
 0xb6a   : > { %v2421_v43 = vmul.f32 %v5080_v40, %v2413_v32 }
 0xb6c   : > { %v2428_v45 = vmul.f32 %v4234_v42, %v2421_v43 }
 0xb6e   : > { %v2435_v46 = vadd.f32 %v4235_v44, %v2428_v45 }
 0xb70   : > { %v5715_v48 = vpack.c.bf16 %v2435_v46, %v2435_v46 }
 0xb72   : > { %4751 = vmatmul.mubr.msk.bf16.vlgmr.msra.gmra.mrb[36].mxu0 %vm760_vm1, %v5715_v48  ;;  %4783 = vmatmul.mubr.msk.bf16.vlgmr.msra.gmra.mrb[72].mxu1 %vm760_vm1, %v5715_v48 }
 0xb73   : > { %4755 = vmatpush3.bf16.msra.mxu0 %v5027_v41  ;;  %4795 = vmatpush3.bf16.msra.mxu1 %v5028_v47 }
 0xb74   : > { %4756 = vmatprep.subr.bf16.mxu0 %v5112_v51  ;;  %4796 = vmatprep.subr.bf16.mxu1 %v5112_v51 }
 0xb75   : > { %4758 = vmatprep.mubr.msk.bf16.mxu0 %vm5113_vm2, %v5112_v51  ;;  %4798 = vmatprep.mubr.msk.bf16.mxu1 %vm5113_vm2, %v5112_v51 }
 0xb77   : > { %4757 = vmatpush3.bf16.msra.mxu0 %v5029_v49  ;;  %4797 = vmatpush3.bf16.msra.mxu1 %v5030_v50 }
 0xb78   : > { %4762 = vmatprep.subr.bf16.mxu0 %v5112_v51  ;;  %4810 = vmatprep.subr.bf16.mxu1 %v5112_v51 }
 0xb7a   : > { %4759 = vmatmul.mubr.msk.bf16.vlgmr.msra.gmra.mrb[40].mxu0 %vm760_vm1, %v5715_v48  ;;  %4799 = vmatmul.mubr.msk.bf16.vlgmr.msra.gmra.mrb[76].mxu1 %vm760_vm1, %v5715_v48 }
 0xb7b   : > { %4763 = vmatpush3.bf16.msra.mxu0 %v5031_v52  ;;  %4811 = vmatpush3.bf16.msra.mxu1 %v5032_v53 }
 0xb7c   : > { %4764 = vmatprep.subr.bf16.mxu0 %v5112_v51  ;;  %4812 = vmatprep.subr.bf16.mxu1 %v5112_v51 }
 0xb7d   : > { %4766 = vmatprep.mubr.msk.bf16.mxu0 %vm5113_vm2, %v5112_v51  ;;  %4814 = vmatprep.mubr.msk.bf16.mxu1 %vm5113_vm2, %v5112_v51 }
 0xb7f   : > { %4765 = vmatpush3.bf16.msra.mxu0 %v5033_v54  ;;  %4813 = vmatpush3.bf16.msra.mxu1 %v5034_v55  ;;  %v4325_v55 = vld [vmem:[%s6085_s1 + $0x5] ss:$0 sm:$0xff] }
 0xb80   : > { %4770 = vmatprep.subr.bf16.mxu0 %v5112_v51  ;;  %4826 = vmatprep.subr.bf16.mxu1 %v5112_v51 }
 0xb82   : > { %4767 = vmatmul.mubr.msk.bf16.vlgmr.msra.gmra.mrb[44].mxu0 %vm760_vm1, %v5715_v48  ;;  %4815 = vmatmul.mubr.msk.bf16.vlgmr.msra.gmra.mrb[80].mxu1 %vm760_vm1, %v5715_v48 }
 0xb83   : > { %4771 = vmatpush3.bf16.msra.mxu0 %v5035_v56  ;;  %4827 = vmatpush3.bf16.msra.mxu1 %v5036_v57 }
 0xb84   : > { %4772 = vmatprep.subr.bf16.mxu0 %v5112_v51  ;;  %4828 = vmatprep.subr.bf16.mxu1 %v5112_v51 }
 0xb85   : > { %4774 = vmatprep.mubr.msk.bf16.mxu0 %vm5113_vm2, %v5112_v51  ;;  %4830 = vmatprep.mubr.msk.bf16.mxu1 %vm5113_vm2, %v5112_v51 }
 0xb87   : > { %4773 = vmatpush3.bf16.msra.mxu0 %v5037_v58  ;;  %4829 = vmatpush3.bf16.msra.mxu1 %v5038_v59 }
 0xb88   : > { %4786 = vmatprep.subr.bf16.mxu0 %v5112_v51  ;;  %4842 = vmatprep.subr.bf16.mxu1 %v5112_v51 }
 0xb8a   : > { %4775 = vmatmul.mubr.msk.bf16.vlgmr.msra.gmra.mrb[48].mxu0 %vm760_vm1, %v5715_v48  ;;  %4831 = vmatmul.mubr.msk.bf16.vlgmr.msra.gmra.mrb[84].mxu1 %vm760_vm1, %v5715_v48 }
 0xb8b   : > { %4787 = vmatpush3.bf16.msra.mxu0 %v5039_v60  ;;  %4790 = vmatprep.mubr.msk.bf16.mxu0 %vm5113_vm2, %v5112_v51 }
 0xb8c   : > { %4788 = vmatprep.subr.bf16.mxu0 %v5112_v51  ;;  %4844 = vmatprep.mubr.msk.bf16.mxu1 %vm5113_vm2, %v5112_v51 }
 0xb8f   : > { %4789 = vmatpush3.bf16.msra.mxu0 %v5040_v61 }
 0xb90   : > { %4802 = vmatprep.subr.bf16.mxu0 %v5112_v51 }
 0xb92   : > { %4791 = vmatmul.mubr.msk.bf16.vlgmr.msra.gmra.mrb[52].mxu0 %vm760_vm1, %v5715_v48 }
 0xb93   : > { %4803 = vmatpush3.bf16.msra.mxu0 %v5041_v62  ;;  %4806 = vmatprep.mubr.msk.bf16.mxu0 %vm5113_vm2, %v5112_v51 }
 0xb94   : > { %4804 = vmatprep.subr.bf16.mxu0 %v5112_v51 }
 0xb97   : > { %4805 = vmatpush3.bf16.msra.mxu0 %v5042_v63 }
 0xb98   : > { %4818 = vmatprep.subr.bf16.mxu0 %v5112_v51 }
 0xb9a   : > { %4807 = vmatmul.mubr.msk.bf16.vlgmr.msra.gmra.mrb[56].mxu0 %vm760_vm1, %v5715_v48 }
 0xb9b   : > { %4819 = vmatpush3.bf16.msra.mxu0 %v5043_v0  ;;  %4822 = vmatprep.mubr.msk.bf16.mxu0 %vm5113_vm2, %v5112_v51  ;;  %v4327_v0 = vld [vmem:[%s6085_s1 + $0x7] ss:$0 sm:$0xff] }
 0xb9c   : > { %4820 = vmatprep.subr.bf16.mxu0 %v5112_v51 }
 0xb9f   : > { %4821 = vmatpush3.bf16.msra.mxu0 %v5044_v1 }
 0xba0   : > { %4834 = vmatprep.subr.bf16.mxu0 %v5112_v51 }
 0xba2   : > { %4823 = vmatmul.mubr.msk.bf16.vlgmr.msra.gmra.mrb[60].mxu0 %vm760_vm1, %v5715_v48 }
 0xba3   : > { %4835 = vmatpush3.bf16.msra.mxu0 %v5045_v2  ;;  %4838 = vmatprep.mubr.msk.bf16.mxu0 %vm5113_vm2, %v5112_v51 }
 0xba4   : > { %4836 = vmatprep.subr.bf16.mxu0 %v5112_v51 }
 0xba7   : > { %4837 = vmatpush3.bf16.msra.mxu0 %v5046_v3 }
 0xba8   : > { %4848 = vmatprep.subr.bf16.mxu0 %v5112_v51 }
 0xbaa   : > { %4839 = vmatmul.mubr.msk.bf16.vlgmr.msra.gmra.mrb[64].mxu0 %vm760_vm1, %v5715_v48 }
 0xbab   : > { %4850 = vmatprep.mubr.msk.bf16.mxu0 %vm5113_vm2, %v5112_v51 }
 0xc45   : > { %v2535_v4 = vpop.f32.mrb[36].mxu0  ;;  %v2743_v5 = vpop.f32.mrb[72].mxu1 }
 0xc46   : > { %v3183_v6 = vpack.c.bf16 %v2743_v5, %v2743_v5  ;;  %v4752_v7 = vpop.f32.mrb[37].mxu0  ;;  %v4784_v8 = vpop.f32.mrb[73].mxu1  ;;  %v3142_v15 = vadd.f32 %v4324_v9, %v2535_v4  ;;  %v4333_v5 = vld [vmem:[%s6086_s22 + $0x5] ss:$0 sm:$0xff] }
 0xc47   : > { %v2538_v10 = vpop.f32.mrb[38].mxu0  ;;  %v2746_v11 = vpop.f32.mrb[74].mxu1 }
 0xc48   : > { %v3196_v12 = vsel %vm1541_vm3, %v3183_v6, 0  ;;  %v4753_v13 = vpop.f32.mrb[39].mxu0  ;;  %v4785_v14 = vpop.f32.mrb[75].mxu1  ;;  %v3179_v18 = vpack.c.bf16 %v3142_v15, %v3142_v15 }
 0xc49   : > { %4843 = vmatpush3.bf16.xpose.msra.mxu1 %v3196_v12 }
 0xc4a   : > { %4854 = vmatprep.subr.bf16.mxu1 %v5112_v51 }
 0xc4d   : > { %v2587_v16 = vpop.f32.mrb[40].mxu0  ;;  %v2847_v17 = vpop.f32.mrb[76].mxu1 }
 0xc4e   : > { %v3185_v19 = vpack.c.bf16 %v2847_v17, %v2847_v17  ;;  %v4760_v20 = vpop.f32.mrb[41].mxu0  ;;  %v4800_v22 = vpop.f32.mrb[77].mxu1  ;;  %v3143_v59 = vadd.f32 %v4325_v55, %v2587_v16 }
 0xc4f   : > { %v2590_v23 = vpop.f32.mrb[42].mxu0  ;;  %v2850_v24 = vpop.f32.mrb[78].mxu1 }
 0xc50   : > { %v3288_v25 = vsel %vm1541_vm3, %v3185_v19, 0  ;;  %v4761_v26 = vpop.f32.mrb[43].mxu0  ;;  %v4801_v28 = vpop.f32.mrb[79].mxu1  ;;  %4845 = vmatmul.mubr.msk.bf16.vlgmr.msra.gmra.mrb[88].mxu1 %vm1541_vm3, %v3179_v18  ;;  %v3180_v61 = vpack.c.bf16 %v3143_v59, %v3143_v59  ;;  %v4336_v18 = vld [vmem:[%s6055_s6 + $0x20] sm:$0xff] }
 0xc51   : > { %4855 = vmatpush3.bf16.xpose.msra.mxu1 %v3288_v25  ;;  %4856 = vmatprep.mubr.msk.bf16.mxu1 %vm5113_vm2, %v5112_v51  ;;  %v4338_v26 = vld [vmem:[%s6055_s6 + $0x30] sm:$0xff] }
 0xc52   : > { %4866 = vmatprep.subr.bf16.mxu1 %v5112_v51 }
 0xc55   : > { %v2639_v32 = vpop.f32.mrb[44].mxu0  ;;  %v2951_v33 = vpop.f32.mrb[80].mxu1 }
 0xc56   : > { %v3144_v34 = vadd.f32 %v4326_v29, %v2639_v32  ;;  %v3175_v21 = vadd.f32 %v4332_v30, %v2951_v33  ;;  %v4768_v35 = vpop.f32.mrb[45].mxu0  ;;  %v4816_v36 = vpop.f32.mrb[81].mxu1 }
 0xc57   : > { %v2642_v37 = vpop.f32.mrb[46].mxu0  ;;  %v2954_v38 = vpop.f32.mrb[82].mxu1 }
 0xc58   : > { %v3181_v39 = vpack.c.bf16 %v3144_v34, %v3144_v34  ;;  %v3424_v31 = vpack.c.bf16 %v3175_v21, %v3175_v21  ;;  %v4769_v40 = vpop.f32.mrb[47].mxu0  ;;  %v4817_v42 = vpop.f32.mrb[83].mxu1  ;;  %v4337_v21 = vld [vmem:[%s6055_s6 + $0x28] sm:$0xff] }
 0xc59   : > { %v4339_v40 = vld [vmem:[%s6055_s6 + $0x38] sm:$0xff] }
 0xc5a   : > { %v3432_v43 = vsel %vm1781_vm4, %v3424_v31, 0  ;;  %4857 = vmatmul.mubr.msk.bf16.vlgmr.msra.gmra.mrb[92].mxu1 %vm1541_vm3, %v3181_v39 }
 0xc5b   : > { %4867 = vmatpush3.bf16.msra.mxu1 %v3432_v43  ;;  %4868 = vmatprep.mubr.msk.bf16.mxu1 %vm5113_vm2, %v5112_v51 }
 0xc5c   : > { %4878 = vmatprep.subr.bf16.mxu1 %v5112_v51 }
 0xc5d   : > { %v2691_v44 = vpop.f32.mrb[48].mxu0  ;;  %v5860_v45 = vpop.f32.mrb[84].mxu1 }
 0xc5e   : > { %v4776_v46 = vpop.f32.mrb[49].mxu0  ;;  %v4832_v41 = vpop.f32.mrb[85].mxu1  ;;  %v3145_v4 = vadd.f32 %v4327_v0, %v2691_v44 }
 0xc5f   : > { %v2694_v47 = vpop.f32.mrb[50].mxu0  ;;  %v3058_v48 = vpop.f32.mrb[86].mxu1 }
 0xc60   : > { %v4777_v49 = vpop.f32.mrb[51].mxu0  ;;  %v4833_v50 = vpop.f32.mrb[87].mxu1  ;;  %v3182_v7 = vpack.c.bf16 %v3145_v4, %v3145_v4 }
 0xc65   : > { %v2795_v52 = vpop.f32.mrb[52].mxu0 }
 0xc66   : > { %v3184_v53 = vpack.c.bf16 %v2795_v52, %v2795_v52  ;;  %v4792_v54 = vpop.f32.mrb[53].mxu0 }
 0xc67   : > { %v2798_v56 = vpop.f32.mrb[54].mxu0 }
 0xc68   : > { %v3242_v57 = vsel %vm1541_vm3, %v3184_v53, 0  ;;  %v4793_v58 = vpop.f32.mrb[55].mxu0 }
 0xc69   : > { %4849 = vmatpush3.bf16.xpose.msra.mxu0 %v3242_v57 }
 0xc6a   : > { %4860 = vmatprep.subr.bf16.mxu0 %v5112_v51 }
 0xc6d   : > { %v2899_v60 = vpop.f32.mrb[56].mxu0 }
 0xc6e   : > { %v3186_v62 = vpack.c.bf16 %v2899_v60, %v2899_v60  ;;  %v4808_v63 = vpop.f32.mrb[57].mxu0 }
 0xc6f   : > { %v2902_v1 = vpop.f32.mrb[58].mxu0 }
 0xc70   : > { %v3334_v2 = vsel %vm1541_vm3, %v3186_v62, 0  ;;  %v4809_v3 = vpop.f32.mrb[59].mxu0  ;;  %4851 = vmatmul.mubr.msk.bf16.vlgmr.msra.gmra.mrb[68].mxu0 %vm1541_vm3, %v3180_v61 }
 0xc71   : > { %4861 = vmatpush3.bf16.xpose.msra.mxu0 %v3334_v2  ;;  %4862 = vmatprep.mubr.msk.bf16.mxu0 %vm5113_vm2, %v5112_v51 }
 0xc72   : > { %4872 = vmatprep.subr.bf16.mxu0 %v5112_v51 }
 0xc75   : > { %v3003_v6 = vpop.f32.mrb[60].mxu0 }
 0xc76   : > { %v3176_v8 = vadd.f32 %v4333_v5, %v3003_v6  ;;  %v4824_v9 = vpop.f32.mrb[61].mxu0  ;;  %v4334_v6 = vld [vmem:[%s6086_s22 + $0x6] ss:$0 sm:$0xff] }
 0xc77   : > { %v3006_v10 = vpop.f32.mrb[62].mxu0 }
 0xc78   : > { %v3425_v11 = vpack.c.bf16 %v3176_v8, %v3176_v8  ;;  %v4825_v12 = vpop.f32.mrb[63].mxu0  ;;  %4863 = vmatmul.mubr.msk.bf16.vlgmr.msra.gmra.mrb[72].mxu0 %vm1541_vm3, %v3182_v7  ;;  %v3177_v7 = vadd.f32 %v4334_v6, %v5860_v45 }
 0xc79   : > { %4874 = vmatprep.mubr.msk.bf16.mxu0 %vm5113_vm2, %v5112_v51 }
 0xc7a   : > { %v3478_v13 = vsel %vm1781_vm4, %v3425_v11, 0  ;;  %v3426_v10 = vpack.c.bf16 %v3177_v7, %v3177_v7 }
 0xc7b   : > { %4873 = vmatpush3.bf16.msra.mxu0 %v3478_v13 }
 0xc7c   : > { %4884 = vmatprep.subr.bf16.mxu0 %v5112_v51  ;;  %v3524_v13 = vsel %vm1781_vm4, %v3426_v10, 0 }
 0xc7d   : > { %v5883_v14 = vpop.f32.mrb[64].mxu0 }
 0xc7e   : > { %v4840_v15 = vpop.f32.mrb[65].mxu0 }
 0xc7f   : > { %v3110_v16 = vpop.f32.mrb[66].mxu0 }
 0xc80   : > { %v4841_v17 = vpop.f32.mrb[67].mxu0 }
 0xd23   : > { %v3232_v19 = vpop.f32.mrb[88].mxu1 }
 0xd24   : > { %v3233_v20 = vadd.f32 %v4336_v18, %v3232_v19  ;;  %v4846_v22 = vpop.f32.mrb[89].mxu1  ;;  %v4335_v18 = vld [vmem:[%s6086_s22 + $0x7] ss:$0 sm:$0xff] }
 0xd25   : > { %v3235_v23 = vpop.f32.mrb[90].mxu1  ;;  %v3178_v19 = vadd.f32 %v4335_v18, %v5883_v14  ;;  %v4348_v14 = vld [vmem:[%s6056_s7 + $0x10] sm:$0xf]  ;;  %v4359_v18 = vld [vmem:[%s6060_s11 + $0x1] ss:$0 sm:$0xff] }
 0xd26   : > { %v4847_v24 = vpop.f32.mrb[91].mxu1  ;;  %v3376_v25 = vsel %vm1541_vm3, %v3233_v20, -inf }
 0xd27   : > { %3377 = vmax.xlane.f32.xlu0 %v3376_v25  ;;  %v3427_v23 = vpack.c.bf16 %v3178_v19, %v3178_v19 }
 0xd2d   : > { %v3324_v28 = vpop.f32.mrb[92].mxu1 }
 0xd2e   : > { %v3325_v29 = vadd.f32 %v4338_v26, %v3324_v28  ;;  %v4858_v30 = vpop.f32.mrb[93].mxu1  ;;  %v3570_v26 = vsel %vm1781_vm4, %v3427_v23, 0 }
 0xd2f   : > { %v3327_v32 = vpop.f32.mrb[94].mxu1 }
 0xd30   : > { %v4859_v33 = vpop.f32.mrb[95].mxu1  ;;  %v3382_v34 = vsel %vm1541_vm3, %v3325_v29, -inf  ;;  %v3625_v32 = vsel %vm1781_vm4, %v4348_v14, 0  ;;  %v5047_v14 = vld [vmem:[%s6063_s14 + $0x10] sm:$0xff]  }
 0xd31   : > { %3383 = vmax.xlane.f32.xlu0 %v3382_v34  ;;  %v4349_v33 = vld [vmem:[%s6056_s7 + $0x14] sm:$0xf] }
 0xd32   : > { %v3671_v34 = vsel %vm1781_vm4, %v4349_v33, 0 }
 0xd43   : > { %v3278_v35 = vpop.f32.mrb[68].mxu0 }
 0xd44   : > { %v3279_v36 = vadd.f32 %v4337_v21, %v3278_v35  ;;  %v4852_v37 = vpop.f32.mrb[69].mxu0  ;;  %v4350_v21 = vld [vmem:[%s6056_s7 + $0x18] sm:$0xf] }
 0xd45   : > { %v3281_v38 = vpop.f32.mrb[70].mxu0 }
 0xd46   : > { %v4853_v39 = vpop.f32.mrb[71].mxu0  ;;  %v3379_v31 = vsel %vm1541_vm3, %v3279_v36, -inf  ;;  %v3717_v38 = vsel %vm1781_vm4, %v4350_v21, 0 }
 0xd47   : > { %3380 = vmax.xlane.f32.xlu1 %v3379_v31 }
 0xd4b   : > { %v3370_v42 = vpop.f32.mrb[72].mxu0 }
 0xd4c   : > { %v3371_v43 = vadd.f32 %v4339_v40, %v3370_v42  ;;  %v4864_v44 = vpop.f32.mrb[73].mxu0 }
 0xd4d   : > { %v3373_v46 = vpop.f32.mrb[74].mxu0 }
 0xd4e   : > { %v4865_v41 = vpop.f32.mrb[75].mxu0  ;;  %v3385_v47 = vsel %vm1541_vm3, %v3371_v43, -inf }
 0xd4f   : > { %3386 = vmax.xlane.f32.xlu1 %v3385_v47  ;;  %v4351_v41 = vld [vmem:[%s6056_s7 + $0x1c] sm:$0xf] }
 0xdb4   : > { %v3378_v48 = vpop.xlane.xlu0 %3377 }
 0xdb5   : > { %v3388_v49 = vsub.f32 %v3233_v20, %v3378_v48 }
 0xdb7   : > { %v3392_v50 = vmul.f32 1.442695, %v3388_v49 }
 0xdb9   : > { %5081 = vpow2.f32 %v3392_v50  ;;  %v3763_v50 = vsel %vm1781_vm4, %v4351_v41, 0  ;;  %v5054_v41 = vld [vmem:[%s6065_s16 + $0x68] sm:$0xff]  }
 0xdbe   : > { %v3384_v52 = vpop.xlane.xlu0 %3383 }
 0xdbf   : > { %v3390_v53 = vsub.f32 %v3325_v29, %v3384_v52 }
 0xdc1   : > { %v3396_v54 = vmul.f32 1.442695, %v3390_v53 }
 0xdc3   : > { %v5082_v55 = vpop.eup %5081  ;;  %5083 = vpow2.f32 %v3396_v54 }
 0xdc4   : > { %v3400_v56 = vsel %vm1541_vm3, %v5082_v55, 0.0 }
 0xdc5   : > { %3401 = vadd.xlane.f32.xlu0 %v3400_v56 }
 0xdcd   : > { %v5084_v57 = vpop.eup %5083 }
 0xdce   : > { %v3406_v58 = vsel %vm1541_vm3, %v5084_v57, 0.0 }
 0xdcf   : > { %3407 = vadd.xlane.f32.xlu0 %v3406_v58 }
 0xdd4   : > { %v3381_v59 = vpop.xlane.xlu1 %3380 }
 0xdd5   : > { %v3389_v60 = vsub.f32 %v3279_v36, %v3381_v59 }
 0xdd7   : > { %v3394_v61 = vmul.f32 1.442695, %v3389_v60 }
 0xdd9   : > { %5085 = vpow2.f32 %v3394_v61 }
 0xddc   : > { %v3387_v62 = vpop.xlane.xlu1 %3386 }
 0xddd   : > { %v3391_v63 = vsub.f32 %v3371_v43, %v3387_v62 }
 0xddf   : > { %v3398_v0 = vmul.f32 1.442695, %v3391_v63 }
 0xde1   : > { %5087 = vpow2.f32 %v3398_v0 }
 0xde3   : > { %v5086_v1 = vpop.eup %5085 }
 0xde4   : > { %v3403_v2 = vsel %vm1541_vm3, %v5086_v1, 0.0 }
 0xde5   : > { %3404 = vadd.xlane.f32.xlu1 %v3403_v2 }
 0xdeb   : > { %v5088_v3 = vpop.eup %5087 }
 0xdec   : > { %v3409_v4 = vsel %vm1541_vm3, %v5088_v3, 0.0 }
 0xded   : > { %3410 = vadd.xlane.f32.xlu1 %v3409_v4 }
 0xe52   : > { %v3402_v5 = vpop.xlane.xlu0 %3401 }
 0xe53   : > { %5089 = vrcp.f32 %v3402_v5 }
 0xe5c   : > { %v3408_v8 = vpop.xlane.xlu0 %3407 }
 0xe5d   : > { %v5090_v9 = vpop.eup %5089  ;;  %5091 = vrcp.f32 %v3408_v8 }
 0xe5e   : > { %v3416_v11 = vmul.f32 %v5090_v9, %v5082_v55 }
 0xe60   : > { %v3420_v12 = vpack.c.bf16 %v3416_v11, %v3416_v11 }
 0xe62   : > { %4869 = vmatmul.mubr.msk.bf16.vlgmr.msra.gmra.mrb[96].mxu1 %vm1541_vm3, %v3420_v12 }
 0xe63   : > { %4879 = vmatpush3.bf16.msra.mxu1 %v3524_v13  ;;  %4880 = vmatprep.mubr.msk.bf16.mxu1 %vm5113_vm2, %v5112_v51 }
 0xe64   : > { %4890 = vmatprep.subr.bf16.mxu1 %v5112_v51 }
 0xe67   : > { %v5092_v15 = vpop.eup %5091 }
 0xe68   : > { %v3418_v16 = vmul.f32 %v5092_v15, %v5084_v57  ;;  %v4358_v15 = vld [vmem:[%s6057_s8 + $0x1] ss:$0 sm:$0xff] }
 0xe6a   : > { %v3422_v17 = vpack.c.bf16 %v3418_v16, %v3418_v16 }
 0xe6c   : > { %4881 = vmatmul.mubr.msk.bf16.vlgmr.msra.gmra.mrb[100].mxu1 %vm1541_vm3, %v3422_v17 }
 0xe6d   : > { %4892 = vmatprep.mubr.msk.bf16.mxu1 %vm5113_vm2, %v5112_v51  ;;  %4891 = vmatpush3.bf16.msra.mxu1 %v3625_v32 }
 0xe6e   : > { %4902 = vmatprep.subr.bf16.mxu1 %v5112_v51 }
 0xe72   : > { %v3405_v45 = vpop.xlane.xlu1 %3404 }
 0xe73   : > { %5093 = vrcp.f32 %v3405_v45 }
 0xe7a   : > { %v3411_v20 = vpop.xlane.xlu1 %3410 }
 0xe7b   : > { %5095 = vrcp.f32 %v3411_v20 }
 0xe7d   : > { %v5094_v22 = vpop.eup %5093 }
 0xe7e   : > { %v3417_v24 = vmul.f32 %v5094_v22, %v5086_v1 }
 0xe80   : > { %v3421_v25 = vpack.c.bf16 %v3417_v24, %v3417_v24 }
 0xe82   : > { %4875 = vmatmul.mubr.msk.bf16.vlgmr.msra.gmra.mrb[76].mxu0 %vm1541_vm3, %v3421_v25 }
 0xe83   : > { %4885 = vmatpush3.bf16.msra.mxu0 %v3570_v26  ;;  %4886 = vmatprep.mubr.msk.bf16.mxu0 %vm5113_vm2, %v5112_v51 }
 0xe84   : > { %4896 = vmatprep.subr.bf16.mxu0 %v5112_v51 }
 0xe85   : > { %v5096_v28 = vpop.eup %5095 }
 0xe86   : > { %v3419_v29 = vmul.f32 %v5096_v28, %v5088_v3 }
 0xe88   : > { %v3423_v30 = vpack.c.bf16 %v3419_v29, %v3419_v29 }
 0xe8a   : > { %4887 = vmatmul.mubr.msk.bf16.vlgmr.msra.gmra.mrb[80].mxu0 %vm1541_vm3, %v3423_v30 }
 0xe8b   : > { %4898 = vmatprep.mubr.msk.bf16.mxu0 %vm5113_vm2, %v5112_v51  ;;  %4897 = vmatpush3.bf16.msra.mxu0 %v3671_v34 }
 0xe8c   : > { %4908 = vmatprep.subr.bf16.mxu0 %v5112_v51 }
 0xf35   : > { %v3468_v35 = vpop.f32.mrb[96].mxu1 }
 0xf36   : > { %v3612_v36 = vpack.c.bf16 %v3468_v35, %v3468_v35  ;;  %v4870_v37 = vpop.f32.mrb[97].mxu1  ;;  %v4362_v35 = vld [vmem:[%s6061_s12 + $0x1] ss:$0 sm:$0xff] }
 0xf37   : > { %v3471_v39 = vpop.f32.mrb[98].mxu1  ;;  %v4363_v37 = vld [vmem:[%s6062_s13 + $0x1] ss:$0 sm:$0xff] }
 0xf38   : > { %v4871_v31 = vpop.f32.mrb[99].mxu1  ;;  %4893 = vmatmul.mubr.msk.bf16.vlgmr.msra.gmra.mrb[104].mxu1 %vm1541_vm3, %v3612_v36 }
 0xf39   : > { %4903 = vmatpush3.bf16.msra.mxu1 %v3717_v38  ;;  %4904 = vmatprep.mubr.msk.bf16.mxu1 %vm5113_vm2, %v5112_v51 }
 0xf3a   : > { %4914 = vmatprep.subr.bf16.mxu1 %v5112_v51 }
 0xf3f   : > { %v3560_v40 = vpop.f32.mrb[100].mxu1 }
 0xf40   : > { %v3614_v42 = vpack.c.bf16 %v3560_v40, %v3560_v40  ;;  %v4882_v43 = vpop.f32.mrb[101].mxu1  ;;  %v5049_v40 = vld [vmem:[%s6065_s16 + $0x40] sm:$0xff]  }
 0xf41   : > { %v3563_v44 = vpop.f32.mrb[102].mxu1  ;;  %v5051_v43 = vld [vmem:[%s6065_s16 + $0x50] sm:$0xff]  }
 0xf42   : > { %v4883_v46 = vpop.f32.mrb[103].mxu1  ;;  %4905 = vmatmul.mubr.msk.bf16.vlgmr.msra.gmra.mrb[108].mxu1 %vm1541_vm3, %v3614_v42  ;;  %v5050_v42 = vld [vmem:[%s6065_s16 + $0x48] sm:$0xff]   ;;  %v5052_v44 = vld [vmem:[%s6065_s16 + $0x58] sm:$0xff]  }
 0xf43   : > { %4918 = vmatprep.mubr.msk.bf16.mxu1 %vm5113_vm2, %v5112_v51  ;;  %4915 = vmatpush3.bf16.msra.mxu1 %v5047_v14  ;;  %v5053_v46 = vld [vmem:[%s6065_s16 + $0x60] sm:$0xff]  }
 0xf44   : > { %4916 = vmatprep.subr.bf16.mxu1 %v5112_v51 }
 0xf55   : > { %v3514_v47 = vpop.f32.mrb[76].mxu0 }
 0xf56   : > { %v3613_v48 = vpack.c.bf16 %v3514_v47, %v3514_v47  ;;  %v4876_v49 = vpop.f32.mrb[77].mxu0  ;;  %v5055_v47 = vld [vmem:[%s6065_s16 + $0x70] sm:$0xff]  }
 0xf57   : > { %v3517_v52 = vpop.f32.mrb[78].mxu0  ;;  %v4369_v49 = vld [vmem:[%s6064_s15 + $0x1] ss:$0 sm:$0xff] }
 0xf58   : > { %v4877_v53 = vpop.f32.mrb[79].mxu0  ;;  %4899 = vmatmul.mubr.msk.bf16.vlgmr.msra.gmra.mrb[84].mxu0 %vm1541_vm3, %v3613_v48  ;;  %v5056_v48 = vld [vmem:[%s6065_s16 + $0x78] sm:$0xff]  }
 0xf59   : > { %4909 = vmatpush3.bf16.msra.mxu0 %v3763_v50  ;;  %4910 = vmatprep.mubr.msk.bf16.mxu0 %vm5113_vm2, %v5112_v51 }
 0xf5a   : > { %4922 = vmatprep.subr.bf16.mxu0 %v5112_v51 }
 0xf5d   : > { %v3606_v54 = vpop.f32.mrb[80].mxu0 }
 0xf5e   : > { %v3615_v55 = vpack.c.bf16 %v3606_v54, %v3606_v54  ;;  %v4888_v56 = vpop.f32.mrb[81].mxu0 }
 0xf5f   : > { %v3609_v57 = vpop.f32.mrb[82].mxu0 }
 0xf60   : > { %v4889_v58 = vpop.f32.mrb[83].mxu0  ;;  %4911 = vmatmul.mubr.msk.bf16.vlgmr.msra.gmra.mrb[88].mxu0 %vm1541_vm3, %v3615_v55 }
 0xf61   : > { %4938 = vmatprep.mubr.msk.bf16.mxu0 %vm5113_vm2, %v5112_v51  ;;  %4923 = vmatpush3.bf16.msra.mxu0 %v5049_v40 }
 0xf62   : > { %4924 = vmatprep.subr.bf16.mxu0 %v5112_v51 }
 0xf65   : > { %4925 = vmatpush3.bf16.msra.mxu0 %v5050_v42 }
 0xf66   : > { %4926 = vmatprep.subr.bf16.mxu0 %v5112_v51 }
 0xf69   : > { %4927 = vmatpush3.bf16.msra.mxu0 %v5051_v43 }
 0xf6a   : > { %4928 = vmatprep.subr.bf16.mxu0 %v5112_v51 }
 0xf6d   : > { %4929 = vmatpush3.bf16.msra.mxu0 %v5052_v44 }
 0xf6e   : > { %4930 = vmatprep.subr.bf16.mxu0 %v5112_v51 }
 0xf71   : > { %4931 = vmatpush3.bf16.msra.mxu0 %v5053_v46 }
 0xf72   : > { %4932 = vmatprep.subr.bf16.mxu0 %v5112_v51 }
 0xf75   : > { %4933 = vmatpush3.bf16.msra.mxu0 %v5054_v41 }
 0xf76   : > { %4934 = vmatprep.subr.bf16.mxu0 %v5112_v51 }
 0xf79   : > { %4935 = vmatpush3.bf16.msra.mxu0 %v5055_v47 }
 0xf7a   : > { %4936 = vmatprep.subr.bf16.mxu0 %v5112_v51 }
 0xf7d   : > { %4937 = vmatpush3.bf16.msra.mxu0 %v5056_v48 }
0x100b   : > { %v3661_v59 = vpop.f32.mrb[104].mxu1 }
0x100c   : > { %v4894_v60 = vpop.f32.mrb[105].mxu1  ;;  %v3805_v4 = vsel %vm760_vm1, %v3661_v59, 0.0 }
0x100d   : > { %v3664_v61 = vpop.f32.mrb[106].mxu1 }
0x100e   : > { %v4895_v62 = vpop.f32.mrb[107].mxu1 }
0x1015   : > { %v3753_v63 = vpop.f32.mrb[108].mxu1 }
0x1016   : > { %v4906_v0 = vpop.f32.mrb[109].mxu1  ;;  %v3808_v9 = vsel %vm760_vm1, %v3753_v63, 0.0 }
0x1017   : > { %v3756_v1 = vpop.f32.mrb[110].mxu1 }
0x1018   : > { %v4907_v2 = vpop.f32.mrb[111].mxu1  ;;  %v4390_v1 = vld [vmem:[%s6066_s17 + $0x1] ss:$0 sm:$0xff] }
0x102b   : > { %v3707_v3 = vpop.f32.mrb[84].mxu0 }
0x102c   : > { %v3806_v5 = vsel %vm760_vm1, %v3707_v3, 0.0  ;;  %v4900_v6 = vpop.f32.mrb[85].mxu0  ;;  %v4400_v3 = vld [vmem:[%s6067_s18 + $0x1] ss:$0 sm:$0xff] }
0x102d   : > { %v3807_v7 = vadd.f32 %v3806_v5, %v3805_v4  ;;  %v3710_v8 = vpop.f32.mrb[86].mxu0 }
0x102e   : > { %v4901_v10 = vpop.f32.mrb[87].mxu0 }
0x102f   : > { %v3809_v11 = vadd.f32 %v3808_v9, %v3807_v7 }
0x1033   : > { %v3799_v12 = vpop.f32.mrb[88].mxu0 }
0x1034   : > { %v3810_v13 = vsel %vm760_vm1, %v3799_v12, 0.0  ;;  %v4912_v16 = vpop.f32.mrb[89].mxu0 }
0x1035   : > { %v3811_v17 = vadd.f32 %v3810_v13, %v3809_v11  ;;  %v3802_v45 = vpop.f32.mrb[90].mxu0 }
0x1036   : > { %v4913_v19 = vpop.f32.mrb[91].mxu0 }
0x1037   : > { %v3822_v20 = vadd.f32 %v4358_v15, %v3811_v17 }
0x1039   : > { %v3829_v22 = vmul.f32 %v4359_v18, %v3822_v20  ;;  %v4401_v20 = vld [vmem:[%s6068_s19] ss:$0 sm:$0xff] }
0x103b   : > { %v5972_v23 = vadd.f32 %v3829_v22, %v5681_v27  ;;  %v5048_v27 = vld [vmem:[%s6063_s14 + $0x18] sm:$0xff]  }
0x103c   : > { %4917 = vmatpush3.bf16.msra.mxu1 %v5048_v27 }
0x103d   : > { %v3835_v24 = vsel %vm760_vm1, %v5972_v23, 0.0 }
0x103e   : > { %3836 = vadd.xlane.f32.xlu0 %v3835_v24 }
0x10cb   : > { %v3837_v25 = vpop.xlane.xlu0 %3836 }
0x10cc   : > { %v3838_v26 = vmul.f32 0.03125, %v3837_v25 }
0x10ce   : > { %v3839_v28 = vsub.f32 %v5972_v23, %v3838_v26 }
0x10d0   : > { %v3840_v29 = vmul.f32 %v3839_v28, %v3839_v28 }
0x10d2   : > { %v3841_v30 = vsel %vm760_vm1, %v3840_v29, 0.0 }
0x10d3   : > { %3842 = vadd.xlane.f32.xlu1 %v3841_v30 }
0x1160   : > { %v3843_v32 = vpop.xlane.xlu1 %3842 }
0x1161   : > { %v3844_v33 = vmul.f32 0.03125, %v3843_v32 }
0x1163   : > { %v3845_v34 = vadd.f32 1e-06, %v3844_v33 }
0x1165   : > { %5097 = vrsqrt.f32 %v3845_v34 }
0x116f   : > { %v5098_v21 = vpop.eup %5097 }
0x1170   : > { %v3847_v36 = vmul.f32 %v5098_v21, %v3839_v28 }
0x1172   : > { %v3854_v38 = vmul.f32 %v4362_v35, %v3847_v36 }
0x1174   : > { %v3861_v39 = vadd.f32 %v4363_v37, %v3854_v38 }
0x1176   : > { %v3862_v31 = vpack.c.bf16 %v3861_v39, %v3861_v39 }
0x1178   : > { %4919 = vmatmul.mubr.msk.bf16.vlgmr.msra.gmra.mrb[112].mxu1 %vm760_vm1, %v3862_v31 }
0x124b   : > { %v3925_v50 = vpop.f32.mrb[112].mxu1 }
0x124c   : > { %v3926_v52 = vadd.f32 %v4369_v49, %v3925_v50  ;;  %v4920_v53 = vpop.f32.mrb[113].mxu1 }
0x124d   : > { %v3928_v54 = vpop.f32.mrb[114].mxu1 }
0x124e   : > { %v3931_v55 = vmul.f32 %v3926_v52, %v3926_v52  ;;  %v4921_v56 = vpop.f32.mrb[115].mxu1 }
0x1250   : > { %v3932_v57 = vmul.f32 %v3931_v55, %v3926_v52 }
0x1252   : > { %v3933_v58 = vmul.f32 0.044715, %v3932_v57 }
0x1254   : > { %v3934_v59 = vadd.f32 %v3933_v58, %v3926_v52 }
0x1256   : > { %v3935_v60 = vmul.f32 0.7978846, %v3934_v59 }
0x1258   : > { %5099 = vtanh.f32 %v3935_v60 }
0x1262   : > { %v5100_v61 = vpop.eup %5099 }
0x1263   : > { %v3937_v62 = vadd.f32 1.0, %v5100_v61 }
0x1265   : > { %v3938_v63 = vmul.f32 0.5, %v3937_v62 }
0x1267   : > { %v3939_v51 = vmul.f32 %v3938_v63, %v3926_v52 }
0x1269   : > { %v3940_v0 = vpack.c.bf16 %v3939_v51, %v3939_v51 }
0x126b   : > { %4939 = vmatmul.mubr.bf16.vlgmr.msra.gmra.mrb[92].mxu0 %v3940_v0 }
0x133e   : > { %v4048_v2 = vpop.f32.mrb[92].mxu0 }
0x133f   : > { %v4049_v4 = vadd.f32 %v4390_v1, %v4048_v2  ;;  %v4940_v5 = vpop.f32.mrb[93].mxu0 }
0x1340   : > { %v4051_v6 = vpop.f32.mrb[94].mxu0 }
0x1341   : > { %v4062_v7 = vmul.f32 %v4400_v3, %v4049_v4  ;;  %v4941_v8 = vpop.f32.mrb[95].mxu0 }
0x1343   : > { %v4063_v9 = vadd.f32 %v4062_v7, %v5972_v23  ;;  %v4402_v23 = vld [vmem:[%s6069_s20] ss:$0 sm:$0xff] }
0x1345   : > { %v4066_v10 = vsel %vm760_vm1, %v4063_v9, 0.0 }
0x1346   : > { %4067 = vadd.xlane.f32.xlu0 %v4066_v10 }
0x13d3   : > { %v4068_v11 = vpop.xlane.xlu0 %4067 }
0x13d4   : > { %v4069_v12 = vmul.f32 0.03125, %v4068_v11 }
0x13d6   : > { %v4070_v13 = vsub.f32 %v4063_v9, %v4069_v12 }
0x13d8   : > { %v4071_v15 = vmul.f32 %v4070_v13, %v4070_v13 }
0x13da   : > { %v4072_v16 = vsel %vm760_vm1, %v4071_v15, 0.0 }
0x13db   : > { %4073 = vadd.xlane.f32.xlu1 %v4072_v16 }
0x1468   : > { %v4074_v17 = vpop.xlane.xlu1 %4073 }
0x1469   : > { %v4075_v45 = vmul.f32 0.03125, %v4074_v17 }
0x146b   : > { %v4076_v18 = vadd.f32 1e-06, %v4075_v45 }
0x146d   : > { %5101 = vrsqrt.f32 %v4076_v18 }
0x1477   : > { %v5102_v19 = vpop.eup %5101 }
0x1478   : > { %v4078_v22 = vmul.f32 %v5102_v19, %v4070_v13 }
0x147a   : > { %v4085_v24 = vmul.f32 %v4401_v20, %v4078_v22 }
0x147c   : > { %v4092_v25 = vadd.f32 %v4402_v23, %v4085_v24 }
0x147e   : > { %4093 = vst.msk [vmem:[%s654_s0] sm:$0xff] %vm760_vm1, %v4092_v25 }
0x147f PF: > { %s31_s2 = sadd.s32 1, %s5109_s2  }
0x1480   : > { %p28_p4 = scmp.ge.s32.totalorder %s31_s2, 4  }
0x1482   :  { %30 = sbr.rel (!%p28_p4) target bundleno = 7 (0x7), region = 150 }

</bundles_post_ra>
